<compile_context>
chip_gen: v7x
topology: tpu7x:2x2x1
jax: 0.10.0
libtpu: 0.0.40
codegen_flags: <defaults>
</compile_context>

<pallas_src>
import jax
import jax.numpy as jnp
from jax.experimental import pallas as pl
from jax.experimental.pallas import tpu as pltpu

_CP = 128       # padded conv output channels (6 -> 128, 16 -> 128)
_K1P = 128      # conv1 contraction: 5*5*3  = 75  -> 128
_K2P = 256      # conv2 contraction: 5*5*6  = 150 -> 256
_FKP = 512      # fc1 contraction:   16*5*5 = 400 -> 512
_FNP = 128      # padded FC widths (120 / 84 / 10 -> 128)


def _round_up(x, m):
    return ((x + m - 1) // m) * m


# ---------------------------------------------------------------------------
# Pallas kernels
# ---------------------------------------------------------------------------
def _conv_bn_relu_pool_kernel(a_ref, w_ref, b_ref, o_ref):
    """Fused conv-as-matmul + folded-BN bias + ReLU + 2x2 max-pool (1 image).

    a_ref: (1, 4, M, K) bf16 im2col patches, pre-grouped by pool tap
           (tap t = (hp, wp) = (t // 2, t % 2)); row m inside a tap is the
           pooled output position h2 * Wp + w2.
    w_ref: (K, 128) bf16 conv weight with the BN scale already folded in.
    b_ref: (1, 128) f32 folded BN bias.
    o_ref: (1, M, 128) bf16 pooled activation.

    max over the 4 taps commutes with the monotone +bias / ReLU epilogue, so
    we max the raw per-tap matmul results and apply the epilogue once.
    """
    w = w_ref[...]
    y = jnp.dot(a_ref[0, 0], w, preferred_element_type=jnp.float32)
    for t in range(1, 4):
        y = jnp.maximum(
            y, jnp.dot(a_ref[0, t], w, preferred_element_type=jnp.float32))
    y = jnp.maximum(y + b_ref[...], 0.0)
    o_ref[0] = y.astype(o_ref.dtype)


def _fc_stack_kernel(x_ref, w1_ref, b1_ref, w2_ref, b2_ref, w3_ref, b3_ref,
                     o_ref):
    """Fused fc1(ReLU) -> fc2(ReLU) -> fc3 on one row-tile of the batch."""
    h = jnp.dot(x_ref[...], w1_ref[...], preferred_element_type=jnp.float32)
    h = jnp.maximum(h + b1_ref[...], 0.0).astype(jnp.bfloat16)
    h = jnp.dot(h, w2_ref[...], preferred_element_type=jnp.float32)
    h = jnp.maximum(h + b2_ref[...], 0.0).astype(jnp.bfloat16)
    h = jnp.dot(h, w3_ref[...], preferred_element_type=jnp.float32)
    o_ref[...] = h + b3_ref[...]


# ---------------------------------------------------------------------------
# Kernel wrappers
# ---------------------------------------------------------------------------
def _im2col_pool_taps(x, k, cin):
    """Valid-conv im2col (stride 1) grouped by 2x2 pool tap, built in bf16.

    x: (N, H, W, C) bf16 (only the first `cin` channels are real).
    Returns (N, 4, (Ho//2)*(Wo//2), k*k*cin) with patch-column order
    (kh, kw, c) and tap index t = hp*2 + wp.  Assumes Ho, Wo are even.
    """
    n, h, w, _ = x.shape
    x = x[..., :cin]
    ho, wo = h - k + 1, w - k + 1
    hp, wp = ho // 2, wo // 2
    cols = [x[:, di:di + ho, dj:dj + wo, :]
            for di in range(k) for dj in range(k)]
    p = jnp.stack(cols, axis=3)                       # (N, Ho, Wo, k*k, cin)
    p = p.reshape(n, hp, 2, wp, 2, k * k * cin)
    p = p.transpose(0, 2, 4, 1, 3, 5)                 # (N, 2, 2, Hp, Wp, K)
    return p.reshape(n, 4, hp * wp, k * k * cin)


def conv_bn_relu_pool(x_nhwc, w_p, b_p, *, k, cin):
    """conv(kxk valid) + folded BN + ReLU + 2x2/2 max-pool; one image per grid
    step (exact per-image tiling).  Returns (N, Hp*Wp, 128) bf16."""
    taps = _im2col_pool_taps(x_nhwc, k, cin)          # bf16, (N, 4, M, k*k*cin)
    n, _, m, kr = taps.shape
    kp = w_p.shape[0]
    if kr != kp:                                      # pad K to 128-multiple
        taps = jnp.pad(taps, ((0, 0), (0, 0), (0, 0), (0, kp - kr)))
    return pl.pallas_call(
        _conv_bn_relu_pool_kernel,
        out_shape=jax.ShapeDtypeStruct((n, m, _CP), jnp.bfloat16),
        grid=(n,),
        in_specs=[
            pl.BlockSpec((1, 4, m, kp), lambda i: (i, 0, 0, 0)),
            pl.BlockSpec((kp, _CP), lambda i: (0, 0)),
            pl.BlockSpec((1, _CP), lambda i: (0, 0)),
        ],
        out_specs=pl.BlockSpec((1, m, _CP), lambda i: (i, 0, 0)),
        compiler_params=pltpu.CompilerParams(
            dimension_semantics=("parallel",)),
    )(taps, w_p, b_p)


def fc_stack(x, w1, b1, w2, b2, w3, b3, *, tile_rows=128):
    """Fused fc1/fc2/fc3, gridded over batch row-tiles (weights resident)."""
    n, kp = x.shape
    tm = min(tile_rows, _round_up(n, 8))
    mp = _round_up(n, tm)
    if mp != n:
        x = jnp.pad(x, ((0, mp - n), (0, 0)))
    out = pl.pallas_call(
        _fc_stack_kernel,
        out_shape=jax.ShapeDtypeStruct((mp, _FNP), jnp.float32),
        grid=(mp // tm,),
        in_specs=[
            pl.BlockSpec((tm, kp), lambda i: (i, 0)),
            pl.BlockSpec((kp, _FNP), lambda i: (0, 0)),
            pl.BlockSpec((1, _FNP), lambda i: (0, 0)),
            pl.BlockSpec((_FNP, _FNP), lambda i: (0, 0)),
            pl.BlockSpec((1, _FNP), lambda i: (0, 0)),
            pl.BlockSpec((_FNP, _FNP), lambda i: (0, 0)),
            pl.BlockSpec((1, _FNP), lambda i: (0, 0)),
        ],
        out_specs=pl.BlockSpec((tm, _FNP), lambda i: (i, 0)),
        compiler_params=pltpu.CompilerParams(
            dimension_semantics=("parallel",)),
    )(x, w1, b1, w2, b2, w3, b3)
    return out[:n]


# ---------------------------------------------------------------------------
# Parameters: init, BN folding / lane-dense packing, forward pass
# ---------------------------------------------------------------------------
def init_params(key):
    """PyTorch-layout parameters (Conv2d: (out,in,kh,kw); Linear: (out,in))."""
    ks = jax.random.split(key, 20)

    def u(k, shape, lo=-0.1, hi=0.1):
        return jax.random.uniform(k, shape, jnp.float32, lo, hi)

    return {
        "conv1_w": u(ks[0], (6, 3, 5, 5)),
        "conv1_b": u(ks[1], (6,)),
        "bn1_gamma": 1.0 + u(ks[2], (6,)),
        "bn1_beta": u(ks[3], (6,)),
        "bn1_mean": u(ks[4], (6,)),
        "bn1_var": 1.0 + u(ks[5], (6,), 0.0, 0.2),
        "conv2_w": u(ks[6], (16, 6, 5, 5)),
        "conv2_b": u(ks[7], (16,)),
        "bn2_gamma": 1.0 + u(ks[8], (16,)),
        "bn2_beta": u(ks[9], (16,)),
        "bn2_mean": u(ks[10], (16,)),
        "bn2_var": 1.0 + u(ks[11], (16,), 0.0, 0.2),
        "fc1_w": u(ks[12], (120, 400)),
        "fc1_b": u(ks[13], (120,)),
        "fc2_w": u(ks[14], (84, 120)),
        "fc2_b": u(ks[15], (84,)),
        "fc3_w": u(ks[16], (10, 84)),
        "fc3_b": u(ks[17], (10,)),
    }


def prepare_params(params, eps=1e-5):
    """Fold BN (scale INTO the conv weight, bias into one vector), permute fc1
    to the (h, w, c) flatten order, pad everything lane-dense, cast MXU
    operands to bf16.  Runs ONCE, outside the jitted forward."""

    def pack_conv(w, b, gamma, beta, mean, var, kp):
        cout, cin, kh, kw = w.shape
        scale = gamma / jnp.sqrt(var + eps)
        bias = (b - mean) * scale + beta
        # (kh, kw, cin, cout) row order matches the im2col column order.
        w_mat = jnp.transpose(w, (2, 3, 1, 0)).reshape(kh * kw * cin, cout)
        w_mat = w_mat * scale[None, :]                 # BN scale folded here
        w_pad = jnp.zeros((kp, _CP), jnp.float32).at[
            :kh * kw * cin, :cout].set(w_mat)
        b_pad = jnp.zeros((1, _CP), jnp.float32).at[0, :cout].set(bias)
        return w_pad.astype(jnp.bfloat16), b_pad

    def pack_fc(w, b, kp):
        out_f, in_f = w.shape
        w_pad = jnp.zeros((kp, _FNP), jnp.float32).at[:in_f, :out_f].set(w.T)
        b_pad = jnp.zeros((1, _FNP), jnp.float32).at[0, :out_f].set(b)
        return w_pad.astype(jnp.bfloat16), b_pad

    w1, c1 = pack_conv(params["conv1_w"], params["conv1_b"],
                       params["bn1_gamma"], params["bn1_beta"],
                       params["bn1_mean"], params["bn1_var"], _K1P)
    w2, c2 = pack_conv(params["conv2_w"], params["conv2_b"],
                       params["bn2_gamma"], params["bn2_beta"],
                       params["bn2_mean"], params["bn2_var"], _K2P)

    # fc1 consumes the (h, w, c)-order flatten; permute its columns from
    # PyTorch's (c, h, w) .view(N, -1) order so semantics match exactly.
    fc1_w = params["fc1_w"].reshape(120, 16, 5, 5).transpose(0, 2, 3, 1)
    fc1_w = fc1_w.reshape(120, 400)
    f1w, f1b = pack_fc(fc1_w, params["fc1_b"], _FKP)
    f2w, f2b = pack_fc(params["fc2_w"], params["fc2_b"], _FNP)
    f3w, f3b = pack_fc(params["fc3_w"], params["fc3_b"], _FNP)

    return {"w1": w1, "c1": c1, "w2": w2, "c2": c2,
            "f1w": f1w, "f1b": f1b, "f2w": f2w, "f2b": f2b,
            "f3w": f3w, "f3b": f3b}


def lenet_forward(packed, x_nchw):
    x = jnp.transpose(x_nchw, (0, 2, 3, 1)).astype(jnp.bfloat16)   # NHWC, bf16
    # Conv(3->6,k5) + BN + ReLU + MaxPool2x2, fused          -> (N, 14*14, 128)
    y = conv_bn_relu_pool(x, packed["w1"], packed["c1"], k=5, cin=3)
    y = y.reshape(-1, 14, 14, _CP)
    # Conv(6->16,k5) + BN + ReLU + MaxPool2x2, fused          -> (N, 5*5, 128)
    y = conv_bn_relu_pool(y, packed["w2"], packed["c2"], k=5, cin=6)
    # Flatten real channels in (h, w, c) order (fc1 pre-permuted to match
    # PyTorch's (c, h, w) flatten), pad K 400 -> 512, bf16 throughout.
    n = y.shape[0]
    feat = y[..., :16].reshape(n, 400)
    feat = jnp.pad(feat, ((0, 0), (0, _FKP - 400)))
    logits = fc_stack(feat, packed["f1w"], packed["f1b"],
                      packed["f2w"], packed["f2b"],
                      packed["f3w"], packed["f3b"])                # (N,128) f32
    return logits[:, :10]


# ---------------------------------------------------------------------------
# Pure-JAX f32 reference (mirrors the PyTorch module, eval-mode BN)
# ---------------------------------------------------------------------------
def lenet_reference(params, x_nchw, eps=1e-5):
    def conv(x, w, b):
        y = jax.lax.conv_general_dilated(
            x, w, (1, 1), "VALID",
            dimension_numbers=("NCHW", "OIHW", "NCHW"))
        return y + b[None, :, None, None]

    def bn(x, g, bta, mean, var):
        inv = (g / jnp.sqrt(var + eps))[None, :, None, None]
        return (x - mean[None, :, None, None]) * inv + bta[None, :, None, None]

    def pool(x):
        return jax.lax.reduce_window(x, -jnp.inf, jax.lax.max,
                                     (1, 1, 2, 2), (1, 1, 2, 2), "VALID")

    y = pool(jnp.maximum(bn(conv(x_nchw, params["conv1_w"], params["conv1_b"]),
                            params["bn1_gamma"], params["bn1_beta"],
                            params["bn1_mean"], params["bn1_var"]), 0.0))
    y = pool(jnp.maximum(bn(conv(y, params["conv2_w"], params["conv2_b"]),
                            params["bn2_gamma"], params["bn2_beta"],
                            params["bn2_mean"], params["bn2_var"]), 0.0))
    f = y.reshape(y.shape[0], -1)                       # (c, h, w) flatten
    h = jnp.maximum(f @ params["fc1_w"].T + params["fc1_b"], 0.0)
    h = jnp.maximum(h @ params["fc2_w"].T + params["fc2_b"], 0.0)
    return h @ params["fc3_w"].T + params["fc3_b"]


if __name__ == "__main__":
    key = jax.random.PRNGKey(0)
    pkey, xkey = jax.random.split(key)
    params = init_params(pkey)
    packed = prepare_params(params)

    # CIFAR-sized input: the LeNet flatten (16*5*5) requires 32x32 spatial.
    x = jax.random.normal(xkey, (2, 3, 32, 32), dtype=jnp.float32)

    fwd = jax.jit(lenet_forward)
    logits = fwd(packed, x)
    jax.block_until_ready(logits)
    assert logits.shape == (2, 10) and logits.dtype == jnp.float32

    # Tolerance check vs. f32 reference (bf16 MXU path -> loose tolerance).
    ref = lenet_reference(params, x)
    err = float(jnp.max(jnp.abs(logits - ref)))
    assert err < 5e-2, f"mismatch vs f32 reference: max abs err = {err}"
    print("KERNEL_OK")
</pallas_src>

<mosaic_0001>
module attributes {stable_mosaic.version = 11 : i64} {
  func.func @_conv_bn_relu_pool_kernel(%arg0: i32, %arg1: memref<1x4x196x128xbf16, #tpu.memory_space<vmem>>, %arg2: memref<128x128xbf16, #tpu.memory_space<vmem>>, %arg3: memref<1x128xf32, #tpu.memory_space<vmem>>, %arg4: memref<1x196x128xbf16, #tpu.memory_space<vmem>>) attributes {dimension_semantics = [#tpu.dimension_semantics<parallel>], iteration_bounds = array<i64: 2>, scalar_prefetch = 0 : i64, scratch_operands = 0 : i64, tpu.core_type = #tpu.core_type<tc>, window_params = [{transform_indices = @transform_0, window_bounds = array<i64: 1, 4, 196, 128>}, {pipeline_mode = #tpu.pipeline_mode<synchronous>, transform_indices = @transform_1, window_bounds = array<i64: 128, 128>}, {pipeline_mode = #tpu.pipeline_mode<synchronous>, transform_indices = @transform_2, window_bounds = array<i64: 1, 128>}, {transform_indices = @transform_3, window_bounds = array<i64: 1, 196, 128>}]} {
    %c0 = arith.constant 0 : index
    %c0_0 = arith.constant 0 : index
    %0 = vector.load %arg2[%c0, %c0_0] : memref<128x128xbf16, #tpu.memory_space<vmem>>, vector<128x128xbf16>
    %c0_1 = arith.constant 0 : index
    %c0_2 = arith.constant 0 : index
    %c0_3 = arith.constant 0 : index
    %c0_4 = arith.constant 0 : index
    %1 = vector.load %arg1[%c0_1, %c0_2, %c0_3, %c0_4] : memref<1x4x196x128xbf16, #tpu.memory_space<vmem>>, vector<1x1x196x128xbf16>
    %2 = vector.shape_cast %1 : vector<1x1x196x128xbf16> to vector<196x128xbf16>
    %cst = arith.constant dense<0.000000e+00> : vector<196x128xf32>
    %3 = tpu.matmul %2, %0, %cst {dimension_numbers = #tpu.dot_dimension_numbers<[1], [0], [0], [1], [0, 0, 1, 1], [], []>} : vector<196x128xbf16>, vector<128x128xbf16>, vector<196x128xf32> -> vector<196x128xf32>
    %c0_5 = arith.constant 0 : index
    %c1 = arith.constant 1 : index
    %c0_6 = arith.constant 0 : index
    %c0_7 = arith.constant 0 : index
    %4 = vector.load %arg1[%c0_5, %c1, %c0_6, %c0_7] : memref<1x4x196x128xbf16, #tpu.memory_space<vmem>>, vector<1x1x196x128xbf16>
    %5 = vector.shape_cast %4 : vector<1x1x196x128xbf16> to vector<196x128xbf16>
    %cst_8 = arith.constant dense<0.000000e+00> : vector<196x128xf32>
    %6 = tpu.matmul %5, %0, %cst_8 {dimension_numbers = #tpu.dot_dimension_numbers<[1], [0], [0], [1], [0, 0, 1, 1], [], []>} : vector<196x128xbf16>, vector<128x128xbf16>, vector<196x128xf32> -> vector<196x128xf32>
    %7 = arith.maximumf %3, %6 : vector<196x128xf32>
    %c0_9 = arith.constant 0 : index
    %c2 = arith.constant 2 : index
    %c0_10 = arith.constant 0 : index
    %c0_11 = arith.constant 0 : index
    %8 = vector.load %arg1[%c0_9, %c2, %c0_10, %c0_11] : memref<1x4x196x128xbf16, #tpu.memory_space<vmem>>, vector<1x1x196x128xbf16>
    %9 = vector.shape_cast %8 : vector<1x1x196x128xbf16> to vector<196x128xbf16>
    %cst_12 = arith.constant dense<0.000000e+00> : vector<196x128xf32>
    %10 = tpu.matmul %9, %0, %cst_12 {dimension_numbers = #tpu.dot_dimension_numbers<[1], [0], [0], [1], [0, 0, 1, 1], [], []>} : vector<196x128xbf16>, vector<128x128xbf16>, vector<196x128xf32> -> vector<196x128xf32>
    %11 = arith.maximumf %7, %10 : vector<196x128xf32>
    %c0_13 = arith.constant 0 : index
    %c3 = arith.constant 3 : index
    %c0_14 = arith.constant 0 : index
    %c0_15 = arith.constant 0 : index
    %12 = vector.load %arg1[%c0_13, %c3, %c0_14, %c0_15] : memref<1x4x196x128xbf16, #tpu.memory_space<vmem>>, vector<1x1x196x128xbf16>
    %13 = vector.shape_cast %12 : vector<1x1x196x128xbf16> to vector<196x128xbf16>
    %cst_16 = arith.constant dense<0.000000e+00> : vector<196x128xf32>
    %14 = tpu.matmul %13, %0, %cst_16 {dimension_numbers = #tpu.dot_dimension_numbers<[1], [0], [0], [1], [0, 0, 1, 1], [], []>} : vector<196x128xbf16>, vector<128x128xbf16>, vector<196x128xf32> -> vector<196x128xf32>
    %15 = arith.maximumf %11, %14 : vector<196x128xf32>
    %c0_17 = arith.constant 0 : index
    %c0_18 = arith.constant 0 : index
    %16 = vector.load %arg3[%c0_17, %c0_18] : memref<1x128xf32, #tpu.memory_space<vmem>>, vector<1x128xf32>
    %17 = vector.broadcast %16 : vector<1x128xf32> to vector<196x128xf32>
    %18 = arith.addf %15, %17 : vector<196x128xf32>
    %cst_19 = arith.constant 0.000000e+00 : f32
    %19 = vector.broadcast %cst_19 : f32 to vector<196x128xf32>
    %20 = arith.maximumf %18, %19 : vector<196x128xf32>
    %21 = arith.truncf %20 : vector<196x128xf32> to vector<196x128xbf16>
    %c0_20 = arith.constant 0 : index
    %c0_21 = arith.constant 0 : index
    %c0_22 = arith.constant 0 : index
    %22 = vector.load %arg4[%c0_20, %c0_21, %c0_22] : memref<1x196x128xbf16, #tpu.memory_space<vmem>>, vector<1x196x128xbf16>
    %23 = vector.shape_cast %22 : vector<1x196x128xbf16> to vector<196x128xbf16>
    %24 = vector.shape_cast %21 : vector<196x128xbf16> to vector<1x196x128xbf16>
    tpu.vector_store %arg4[%c0_20, %c0_21, %c0_22], %24 {strides = array<i32>} : memref<1x196x128xbf16, #tpu.memory_space<vmem>>, vector<1x196x128xbf16>,
    return
  }
  func.func @transform_0(%arg0: i32) -> (i32, i32, i32, i32) {
    %c0_i32 = arith.constant 0 : i32
    %c0_i32_0 = arith.constant 0 : i32
    %c0_i32_1 = arith.constant 0 : i32
    %c0_i32_2 = arith.constant 0 : i32
    return %arg0, %c0_i32, %c0_i32_0, %c0_i32_1 : i32, i32, i32, i32
  }
  func.func @transform_1(%arg0: i32) -> (i32, i32) {
    %c0_i32 = arith.constant 0 : i32
    %c0_i32_0 = arith.constant 0 : i32
    %c0_i32_1 = arith.constant 0 : i32
    return %c0_i32, %c0_i32_0 : i32, i32
  }
  func.func @transform_2(%arg0: i32) -> (i32, i32) {
    %c0_i32 = arith.constant 0 : i32
    %c0_i32_0 = arith.constant 0 : i32
    %c0_i32_1 = arith.constant 0 : i32
    return %c0_i32, %c0_i32_0 : i32, i32
  }
  func.func @transform_3(%arg0: i32) -> (i32, i32, i32) {
    %c0_i32 = arith.constant 0 : i32
    %c0_i32_0 = arith.constant 0 : i32
    %c0_i32_1 = arith.constant 0 : i32
    return %arg0, %c0_i32, %c0_i32_0 : i32, i32, i32
  }
}

module attributes {stable_mosaic.version = 11 : i64} {
  func.func @_conv_bn_relu_pool_kernel(%arg0: i32, %arg1: memref<1x4x25x256xbf16, #tpu.memory_space<vmem>>, %arg2: memref<256x128xbf16, #tpu.memory_space<vmem>>, %arg3: memref<1x128xf32, #tpu.memory_space<vmem>>, %arg4: memref<1x25x128xbf16, #tpu.memory_space<vmem>>) attributes {dimension_semantics = [#tpu.dimension_semantics<parallel>], iteration_bounds = array<i64: 2>, scalar_prefetch = 0 : i64, scratch_operands = 0 : i64, tpu.core_type = #tpu.core_type<tc>, window_params = [{transform_indices = @transform_0, window_bounds = array<i64: 1, 4, 25, 256>}, {pipeline_mode = #tpu.pipeline_mode<synchronous>, transform_indices = @transform_1, window_bounds = array<i64: 256, 128>}, {pipeline_mode = #tpu.pipeline_mode<synchronous>, transform_indices = @transform_2, window_bounds = array<i64: 1, 128>}, {transform_indices = @transform_3, window_bounds = array<i64: 1, 25, 128>}]} {
    %c0 = arith.constant 0 : index
    %c0_0 = arith.constant 0 : index
    %0 = vector.load %arg2[%c0, %c0_0] : memref<256x128xbf16, #tpu.memory_space<vmem>>, vector<256x128xbf16>
    %c0_1 = arith.constant 0 : index
    %c0_2 = arith.constant 0 : index
    %c0_3 = arith.constant 0 : index
    %c0_4 = arith.constant 0 : index
    %1 = vector.load %arg1[%c0_1, %c0_2, %c0_3, %c0_4] : memref<1x4x25x256xbf16, #tpu.memory_space<vmem>>, vector<1x1x25x256xbf16>
    %2 = vector.shape_cast %1 : vector<1x1x25x256xbf16> to vector<25x256xbf16>
    %cst = arith.constant dense<0.000000e+00> : vector<25x128xf32>
    %3 = tpu.matmul %2, %0, %cst {dimension_numbers = #tpu.dot_dimension_numbers<[1], [0], [0], [1], [0, 0, 1, 1], [], []>} : vector<25x256xbf16>, vector<256x128xbf16>, vector<25x128xf32> -> vector<25x128xf32>
    %c0_5 = arith.constant 0 : index
    %c1 = arith.constant 1 : index
    %c0_6 = arith.constant 0 : index
    %c0_7 = arith.constant 0 : index
    %4 = vector.load %arg1[%c0_5, %c1, %c0_6, %c0_7] : memref<1x4x25x256xbf16, #tpu.memory_space<vmem>>, vector<1x1x25x256xbf16>
    %5 = vector.shape_cast %4 : vector<1x1x25x256xbf16> to vector<25x256xbf16>
    %cst_8 = arith.constant dense<0.000000e+00> : vector<25x128xf32>
    %6 = tpu.matmul %5, %0, %cst_8 {dimension_numbers = #tpu.dot_dimension_numbers<[1], [0], [0], [1], [0, 0, 1, 1], [], []>} : vector<25x256xbf16>, vector<256x128xbf16>, vector<25x128xf32> -> vector<25x128xf32>
    %7 = arith.maximumf %3, %6 : vector<25x128xf32>
    %c0_9 = arith.constant 0 : index
    %c2 = arith.constant 2 : index
    %c0_10 = arith.constant 0 : index
    %c0_11 = arith.constant 0 : index
    %8 = vector.load %arg1[%c0_9, %c2, %c0_10, %c0_11] : memref<1x4x25x256xbf16, #tpu.memory_space<vmem>>, vector<1x1x25x256xbf16>
    %9 = vector.shape_cast %8 : vector<1x1x25x256xbf16> to vector<25x256xbf16>
    %cst_12 = arith.constant dense<0.000000e+00> : vector<25x128xf32>
    %10 = tpu.matmul %9, %0, %cst_12 {dimension_numbers = #tpu.dot_dimension_numbers<[1], [0], [0], [1], [0, 0, 1, 1], [], []>} : vector<25x256xbf16>, vector<256x128xbf16>, vector<25x128xf32> -> vector<25x128xf32>
    %11 = arith.maximumf %7, %10 : vector<25x128xf32>
    %c0_13 = arith.constant 0 : index
    %c3 = arith.constant 3 : index
    %c0_14 = arith.constant 0 : index
    %c0_15 = arith.constant 0 : index
    %12 = vector.load %arg1[%c0_13, %c3, %c0_14, %c0_15] : memref<1x4x25x256xbf16, #tpu.memory_space<vmem>>, vector<1x1x25x256xbf16>
    %13 = vector.shape_cast %12 : vector<1x1x25x256xbf16> to vector<25x256xbf16>
    %cst_16 = arith.constant dense<0.000000e+00> : vector<25x128xf32>
    %14 = tpu.matmul %13, %0, %cst_16 {dimension_numbers = #tpu.dot_dimension_numbers<[1], [0], [0], [1], [0, 0, 1, 1], [], []>} : vector<25x256xbf16>, vector<256x128xbf16>, vector<25x128xf32> -> vector<25x128xf32>
    %15 = arith.maximumf %11, %14 : vector<25x128xf32>
    %c0_17 = arith.constant 0 : index
    %c0_18 = arith.constant 0 : index
    %16 = vector.load %arg3[%c0_17, %c0_18] : memref<1x128xf32, #tpu.memory_space<vmem>>, vector<1x128xf32>
    %17 = vector.broadcast %16 : vector<1x128xf32> to vector<25x128xf32>
    %18 = arith.addf %15, %17 : vector<25x128xf32>
    %cst_19 = arith.constant 0.000000e+00 : f32
    %19 = vector.broadcast %cst_19 : f32 to vector<25x128xf32>
    %20 = arith.maximumf %18, %19 : vector<25x128xf32>
    %21 = arith.truncf %20 : vector<25x128xf32> to vector<25x128xbf16>
    %c0_20 = arith.constant 0 : index
    %c0_21 = arith.constant 0 : index
    %c0_22 = arith.constant 0 : index
    %22 = vector.load %arg4[%c0_20, %c0_21, %c0_22] : memref<1x25x128xbf16, #tpu.memory_space<vmem>>, vector<1x25x128xbf16>
    %23 = vector.shape_cast %22 : vector<1x25x128xbf16> to vector<25x128xbf16>
    %24 = vector.shape_cast %21 : vector<25x128xbf16> to vector<1x25x128xbf16>
    tpu.vector_store %arg4[%c0_20, %c0_21, %c0_22], %24 {strides = array<i32>} : memref<1x25x128xbf16, #tpu.memory_space<vmem>>, vector<1x25x128xbf16>,
    return
  }
  func.func @transform_0(%arg0: i32) -> (i32, i32, i32, i32) {
    %c0_i32 = arith.constant 0 : i32
    %c0_i32_0 = arith.constant 0 : i32
    %c0_i32_1 = arith.constant 0 : i32
    %c0_i32_2 = arith.constant 0 : i32
    return %arg0, %c0_i32, %c0_i32_0, %c0_i32_1 : i32, i32, i32, i32
  }
  func.func @transform_1(%arg0: i32) -> (i32, i32) {
    %c0_i32 = arith.constant 0 : i32
    %c0_i32_0 = arith.constant 0 : i32
    %c0_i32_1 = arith.constant 0 : i32
    return %c0_i32, %c0_i32_0 : i32, i32
  }
  func.func @transform_2(%arg0: i32) -> (i32, i32) {
    %c0_i32 = arith.constant 0 : i32
    %c0_i32_0 = arith.constant 0 : i32
    %c0_i32_1 = arith.constant 0 : i32
    return %c0_i32, %c0_i32_0 : i32, i32
  }
  func.func @transform_3(%arg0: i32) -> (i32, i32, i32) {
    %c0_i32 = arith.constant 0 : i32
    %c0_i32_0 = arith.constant 0 : i32
    %c0_i32_1 = arith.constant 0 : i32
    return %arg0, %c0_i32, %c0_i32_0 : i32, i32, i32
  }
}

module attributes {stable_mosaic.version = 11 : i64} {
  func.func @_fc_stack_kernel(%arg0: i32, %arg1: memref<8x512xbf16, #tpu.memory_space<vmem>>, %arg2: memref<512x128xbf16, #tpu.memory_space<vmem>>, %arg3: memref<1x128xf32, #tpu.memory_space<vmem>>, %arg4: memref<128x128xbf16, #tpu.memory_space<vmem>>, %arg5: memref<1x128xf32, #tpu.memory_space<vmem>>, %arg6: memref<128x128xbf16, #tpu.memory_space<vmem>>, %arg7: memref<1x128xf32, #tpu.memory_space<vmem>>, %arg8: memref<8x128xf32, #tpu.memory_space<vmem>>) attributes {dimension_semantics = [#tpu.dimension_semantics<parallel>], iteration_bounds = array<i64: 1>, scalar_prefetch = 0 : i64, scratch_operands = 0 : i64, tpu.core_type = #tpu.core_type<tc>, window_params = [{transform_indices = @transform_0, window_bounds = array<i64: 8, 512>}, {pipeline_mode = #tpu.pipeline_mode<synchronous>, transform_indices = @transform_1, window_bounds = array<i64: 512, 128>}, {pipeline_mode = #tpu.pipeline_mode<synchronous>, transform_indices = @transform_2, window_bounds = array<i64: 1, 128>}, {pipeline_mode = #tpu.pipeline_mode<synchronous>, transform_indices = @transform_3, window_bounds = array<i64: 128, 128>}, {pipeline_mode = #tpu.pipeline_mode<synchronous>, transform_indices = @transform_4, window_bounds = array<i64: 1, 128>}, {pipeline_mode = #tpu.pipeline_mode<synchronous>, transform_indices = @transform_5, window_bounds = array<i64: 128, 128>}, {pipeline_mode = #tpu.pipeline_mode<synchronous>, transform_indices = @transform_6, window_bounds = array<i64: 1, 128>}, {transform_indices = @transform_7, window_bounds = array<i64: 8, 128>}]} {
    %c0 = arith.constant 0 : index
    %c0_0 = arith.constant 0 : index
    %0 = vector.load %arg1[%c0, %c0_0] : memref<8x512xbf16, #tpu.memory_space<vmem>>, vector<8x512xbf16>
    %c0_1 = arith.constant 0 : index
    %c0_2 = arith.constant 0 : index
    %1 = vector.load %arg2[%c0_1, %c0_2] : memref<512x128xbf16, #tpu.memory_space<vmem>>, vector<512x128xbf16>
    %cst = arith.constant dense<0.000000e+00> : vector<8x128xf32>
    %2 = tpu.matmul %0, %1, %cst {dimension_numbers = #tpu.dot_dimension_numbers<[1], [0], [0], [1], [0, 0, 1, 1], [], []>} : vector<8x512xbf16>, vector<512x128xbf16>, vector<8x128xf32> -> vector<8x128xf32>
    %c0_3 = arith.constant 0 : index
    %c0_4 = arith.constant 0 : index
    %3 = vector.load %arg3[%c0_3, %c0_4] : memref<1x128xf32, #tpu.memory_space<vmem>>, vector<1x128xf32>
    %4 = vector.broadcast %3 : vector<1x128xf32> to vector<8x128xf32>
    %5 = arith.addf %2, %4 : vector<8x128xf32>
    %cst_5 = arith.constant 0.000000e+00 : f32
    %6 = vector.broadcast %cst_5 : f32 to vector<8x128xf32>
    %7 = arith.maximumf %5, %6 : vector<8x128xf32>
    %8 = arith.truncf %7 : vector<8x128xf32> to vector<8x128xbf16>
    %c0_6 = arith.constant 0 : index
    %c0_7 = arith.constant 0 : index
    %9 = vector.load %arg4[%c0_6, %c0_7] : memref<128x128xbf16, #tpu.memory_space<vmem>>, vector<128x128xbf16>
    %cst_8 = arith.constant dense<0.000000e+00> : vector<8x128xf32>
    %10 = tpu.matmul %8, %9, %cst_8 {dimension_numbers = #tpu.dot_dimension_numbers<[1], [0], [0], [1], [0, 0, 1, 1], [], []>} : vector<8x128xbf16>, vector<128x128xbf16>, vector<8x128xf32> -> vector<8x128xf32>
    %c0_9 = arith.constant 0 : index
    %c0_10 = arith.constant 0 : index
    %11 = vector.load %arg5[%c0_9, %c0_10] : memref<1x128xf32, #tpu.memory_space<vmem>>, vector<1x128xf32>
    %12 = vector.broadcast %11 : vector<1x128xf32> to vector<8x128xf32>
    %13 = arith.addf %10, %12 : vector<8x128xf32>
    %cst_11 = arith.constant 0.000000e+00 : f32
    %14 = vector.broadcast %cst_11 : f32 to vector<8x128xf32>
    %15 = arith.maximumf %13, %14 : vector<8x128xf32>
    %16 = arith.truncf %15 : vector<8x128xf32> to vector<8x128xbf16>
    %c0_12 = arith.constant 0 : index
    %c0_13 = arith.constant 0 : index
    %17 = vector.load %arg6[%c0_12, %c0_13] : memref<128x128xbf16, #tpu.memory_space<vmem>>, vector<128x128xbf16>
    %cst_14 = arith.constant dense<0.000000e+00> : vector<8x128xf32>
    %18 = tpu.matmul %16, %17, %cst_14 {dimension_numbers = #tpu.dot_dimension_numbers<[1], [0], [0], [1], [0, 0, 1, 1], [], []>} : vector<8x128xbf16>, vector<128x128xbf16>, vector<8x128xf32> -> vector<8x128xf32>
    %c0_15 = arith.constant 0 : index
    %c0_16 = arith.constant 0 : index
    %19 = vector.load %arg7[%c0_15, %c0_16] : memref<1x128xf32, #tpu.memory_space<vmem>>, vector<1x128xf32>
    %20 = vector.broadcast %19 : vector<1x128xf32> to vector<8x128xf32>
    %21 = arith.addf %18, %20 : vector<8x128xf32>
    %c0_17 = arith.constant 0 : index
    %c0_18 = arith.constant 0 : index
    %22 = vector.load %arg8[%c0_17, %c0_18] : memref<8x128xf32, #tpu.memory_space<vmem>>, vector<8x128xf32>
    tpu.vector_store %arg8[%c0_17, %c0_18], %21 {strides = array<i32>} : memref<8x128xf32, #tpu.memory_space<vmem>>, vector<8x128xf32>,
    return
  }
  func.func @transform_0(%arg0: i32) -> (i32, i32) {
    %c0_i32 = arith.constant 0 : i32
    %c0_i32_0 = arith.constant 0 : i32
    return %arg0, %c0_i32 : i32, i32
  }
  func.func @transform_1(%arg0: i32) -> (i32, i32) {
    %c0_i32 = arith.constant 0 : i32
    %c0_i32_0 = arith.constant 0 : i32
    %c0_i32_1 = arith.constant 0 : i32
    return %c0_i32, %c0_i32_0 : i32, i32
  }
  func.func @transform_2(%arg0: i32) -> (i32, i32) {
    %c0_i32 = arith.constant 0 : i32
    %c0_i32_0 = arith.constant 0 : i32
    %c0_i32_1 = arith.constant 0 : i32
    return %c0_i32, %c0_i32_0 : i32, i32
  }
  func.func @transform_3(%arg0: i32) -> (i32, i32) {
    %c0_i32 = arith.constant 0 : i32
    %c0_i32_0 = arith.constant 0 : i32
    %c0_i32_1 = arith.constant 0 : i32
    return %c0_i32, %c0_i32_0 : i32, i32
  }
  func.func @transform_4(%arg0: i32) -> (i32, i32) {
    %c0_i32 = arith.constant 0 : i32
    %c0_i32_0 = arith.constant 0 : i32
    %c0_i32_1 = arith.constant 0 : i32
    return %c0_i32, %c0_i32_0 : i32, i32
  }
  func.func @transform_5(%arg0: i32) -> (i32, i32) {
    %c0_i32 = arith.constant 0 : i32
    %c0_i32_0 = arith.constant 0 : i32
    %c0_i32_1 = arith.constant 0 : i32
    return %c0_i32, %c0_i32_0 : i32, i32
  }
  func.func @transform_6(%arg0: i32) -> (i32, i32) {
    %c0_i32 = arith.constant 0 : i32
    %c0_i32_0 = arith.constant 0 : i32
    %c0_i32_1 = arith.constant 0 : i32
    return %c0_i32, %c0_i32_0 : i32, i32
  }
  func.func @transform_7(%arg0: i32) -> (i32, i32) {
    %c0_i32 = arith.constant 0 : i32
    %c0_i32_0 = arith.constant 0 : i32
    return %arg0, %c0_i32 : i32, i32
  }
}

</mosaic_0001>

<bundles_post_ra>
// kernel: lenet_forward.3
= control target key start
LH: loop header
LB: loop body
LE: loop exit
PB: predicated region body
PF: predicated region fallthrough
CT: control target
= control target key end

     0   :  { %s2224_s12 = smov 0   ;;  %s2729_s0 = inlined_call_operand.vmem [shape: bf16[2,4,196,128], index: 0, kind: input, shape index: {}]   ;;  %s2730_s1 = inlined_call_operand.vmem [shape: bf16[128,128], index: 1, kind: input, shape index: {}]   ;;  %s2731_s2 = inlined_call_operand.vmem [shape: f32[1,128], index: 2, kind: input, shape index: {}]   ;;  %s2732_s3 = inlined_call_operand.vmem [shape: bf16[2,196,128], index: 3, kind: output, shape index: {}]  }
   0x1 LB: > { %s1500_s13 = sadd.s32 4294967295, %s2200_s12   ;;  %p1504_p0 = scmp.ge.s32.totalorder %s2200_s12, 1  ;;  %s2200_s12 = sphi %s2224_s12, %s13_s12  }
   0x2   : > { %p137_p1 = scmp.lt.s32.totalorder %s2200_s12, 3 }
   0x4   : > { %p138_p2 = pnand %p1504_p0, %p137_p1 }
   0x6   : > { %141 = sbr.rel (%p138_p2) target bundleno = 469 (0x1d5), region = 32 }
   0xd   : > { %v2134_v0 = vld [vmem:[%s2730_s1] sm:$0xff]   ;;  %v2202_v1 = vmov 0.0   ;;  %v2135_v2 = vld [vmem:[%s2730_s1 + $0x8] sm:$0xff]   ;;  %p161_p3 = scmp.lt.s32.totalorder %s1500_s13, 1  ;;  %vm2203_vm0 = vmmov 0   ;;  %v2136_v3 = vld [vmem:[%s2730_s1 + $0x10] sm:$0xff]  }
   0xe   : > { %1850 = vmatprep.subr.bf16.mxu0 %v2202_v1  ;;  %1918 = vmatprep.subr.bf16.mxu1 %v2202_v1  ;;  %v2137_v4 = vld [vmem:[%s2730_s1 + $0x18] sm:$0xff]   ;;  %v2138_v5 = vld [vmem:[%s2730_s1 + $0x20] sm:$0xff]   ;;  %v2139_v6 = vld [vmem:[%s2730_s1 + $0x28] sm:$0xff]  }
   0xf   : > { %1851 = vmatpush3.bf16.msra.mxu0 %v2134_v0  ;;  %1919 = vmatpush3.bf16.msra.mxu1 %v2134_v0  ;;  %s2767_s13 = smov (!%p161_p3, %s1500_s13), 1  ;;  %v2140_v7 = vld [vmem:[%s2730_s1 + $0x30] sm:$0xff]   ;;  %v2141_v8 = vld [vmem:[%s2730_s1 + $0x38] sm:$0xff]  }
  0x10   : > { %1852 = vmatprep.subr.bf16.mxu0 %v2202_v1  ;;  %1920 = vmatprep.subr.bf16.mxu1 %v2202_v1  ;;  %s2122_s20 = smul.u32 400, %s2767_s13 }
  0x11   : > { %1866 = vmatprep.mubr.msk.bf16.mxu0 %vm2203_vm0, %v2202_v1  ;;  %1934 = vmatprep.mubr.msk.bf16.mxu1 %vm2203_vm0, %v2202_v1  ;;  %s2123_s9 = smul.u32 100, %s2767_s13 }
  0x12   : > { %s2257_s23 = scalar_lea.vmem %s2729_s0, %s2122_s20 }
  0x13   : > { %1853 = vmatpush3.bf16.msra.mxu0 %v2135_v2  ;;  %1921 = vmatpush3.bf16.msra.mxu1 %v2135_v2  ;;  %v2142_v9 = vld [vmem:[%s2257_s23] sm:$0xff]   ;;  %v2144_v11 = vld [vmem:[%s2257_s23 + $0x8] sm:$0xff]   ;;  %v2146_v13 = vld [vmem:[%s2257_s23 + $0x10] sm:$0xff]   ;;  %s2622_s14 = scalar_lea.vmem %s2732_s3, %s2123_s9 }
  0x14   : > { %1854 = vmatprep.subr.bf16.mxu0 %v2202_v1  ;;  %1922 = vmatprep.subr.bf16.mxu1 %v2202_v1  ;;  %v2143_v10 = vld [vmem:[%s2257_s23 + $0x64] sm:$0xff]   ;;  %v2145_v12 = vld [vmem:[%s2257_s23 + $0x6c] sm:$0xff]   ;;  %v2147_v14 = vld [vmem:[%s2257_s23 + $0x74] sm:$0xff]  }
  0x15   : > { %v2148_v15 = vld [vmem:[%s2257_s23 + $0x18] sm:$0xff]   ;;  %v2150_v17 = vld [vmem:[%s2257_s23 + $0x20] sm:$0xff]   ;;  %v2152_v19 = vld [vmem:[%s2257_s23 + $0x28] sm:$0xff]  }
  0x16   : > { %v2149_v16 = vld [vmem:[%s2257_s23 + $0x7c] sm:$0xff]   ;;  %v2151_v18 = vld [vmem:[%s2257_s23 + $0x84] sm:$0xff]   ;;  %v2153_v20 = vld [vmem:[%s2257_s23 + $0x8c] sm:$0xff]  }
  0x17   : > { %1855 = vmatpush3.bf16.msra.mxu0 %v2136_v3  ;;  %1923 = vmatpush3.bf16.msra.mxu1 %v2136_v3  ;;  %v2154_v21 = vld [vmem:[%s2257_s23 + $0x30] sm:$0xff]   ;;  %v2156_v23 = vld [vmem:[%s2257_s23 + $0x38] sm:$0xff]   ;;  %v2158_v25 = vld [vmem:[%s2257_s23 + $0x40] sm:$0xff]  }
  0x18   : > { %1856 = vmatprep.subr.bf16.mxu0 %v2202_v1  ;;  %1924 = vmatprep.subr.bf16.mxu1 %v2202_v1  ;;  %v2155_v22 = vld [vmem:[%s2257_s23 + $0x94] sm:$0xff]   ;;  %v2157_v24 = vld [vmem:[%s2257_s23 + $0x9c] sm:$0xff]   ;;  %v2159_v26 = vld [vmem:[%s2257_s23 + $0xa4] sm:$0xff]  }
  0x19   : > { %v2160_v27 = vld [vmem:[%s2257_s23 + $0x48] sm:$0xff]   ;;  %v2162_v29 = vld [vmem:[%s2257_s23 + $0x50] sm:$0xff]   ;;  %v2164_v31 = vld [vmem:[%s2257_s23 + $0x58] sm:$0xff]  }
  0x1a   : > { %v2161_v28 = vld [vmem:[%s2257_s23 + $0xac] sm:$0xff]   ;;  %v2163_v30 = vld [vmem:[%s2257_s23 + $0xb4] sm:$0xff]   ;;  %v2165_v32 = vld [vmem:[%s2257_s23 + $0xbc] sm:$0xff]  }
  0x1b   : > { %1857 = vmatpush3.bf16.msra.mxu0 %v2137_v4  ;;  %1925 = vmatpush3.bf16.msra.mxu1 %v2137_v4  ;;  %v2166_v33 = vld [vmem:[%s2257_s23 + $0x60] ss:$0 sps:$4 sm:$0x33]   ;;  %v2167_v34 = vld [vmem:[%s2257_s23 + $0xc4] ss:$0 sps:$4 sm:$0x33]  }
  0x1c   : > { %1858 = vmatprep.subr.bf16.mxu0 %v2202_v1  ;;  %1926 = vmatprep.subr.bf16.mxu1 %v2202_v1  ;;  %v2168_v35 = vld [vmem:[%s2257_s23 + $0xc8] sm:$0xff]   ;;  %v2170_v37 = vld [vmem:[%s2257_s23 + $0xd0] sm:$0xff]   ;;  %v2172_v39 = vld [vmem:[%s2257_s23 + $0xd8] sm:$0xff]  }
  0x1d   : > { %v2169_v36 = vld [vmem:[%s2257_s23 + $0x12c] sm:$0xff]   ;;  %v2171_v38 = vld [vmem:[%s2257_s23 + $0x134] sm:$0xff]   ;;  %v2173_v40 = vld [vmem:[%s2257_s23 + $0x13c] sm:$0xff]  }
  0x1e   : > { %v2174_v41 = vld [vmem:[%s2257_s23 + $0xe0] sm:$0xff]   ;;  %v2176_v43 = vld [vmem:[%s2257_s23 + $0xe8] sm:$0xff]   ;;  %v2178_v45 = vld [vmem:[%s2257_s23 + $0xf0] sm:$0xff]  }
  0x1f   : > { %1859 = vmatpush3.bf16.msra.mxu0 %v2138_v5  ;;  %1927 = vmatpush3.bf16.msra.mxu1 %v2138_v5  ;;  %v2175_v42 = vld [vmem:[%s2257_s23 + $0x144] sm:$0xff]   ;;  %v2177_v44 = vld [vmem:[%s2257_s23 + $0x14c] sm:$0xff]   ;;  %v2179_v46 = vld [vmem:[%s2257_s23 + $0x154] sm:$0xff]  }
  0x20   : > { %1860 = vmatprep.subr.bf16.mxu0 %v2202_v1  ;;  %1928 = vmatprep.subr.bf16.mxu1 %v2202_v1  ;;  %v2180_v47 = vld [vmem:[%s2257_s23 + $0xf8] sm:$0xff]   ;;  %v2182_v49 = vld [vmem:[%s2257_s23 + $0x100] sm:$0xff]   ;;  %v2184_v51 = vld [vmem:[%s2257_s23 + $0x108] sm:$0xff]  }
  0x21   : > { %v2181_v48 = vld [vmem:[%s2257_s23 + $0x15c] sm:$0xff]   ;;  %v2183_v50 = vld [vmem:[%s2257_s23 + $0x164] sm:$0xff]   ;;  %v2185_v52 = vld [vmem:[%s2257_s23 + $0x16c] sm:$0xff]  }
  0x22   : > { %v2186_v53 = vld [vmem:[%s2257_s23 + $0x110] sm:$0xff]   ;;  %v2188_v55 = vld [vmem:[%s2257_s23 + $0x118] sm:$0xff]   ;;  %v2190_v57 = vld [vmem:[%s2257_s23 + $0x120] sm:$0xff]  }
  0x23   : > { %1861 = vmatpush3.bf16.msra.mxu0 %v2139_v6  ;;  %1929 = vmatpush3.bf16.msra.mxu1 %v2139_v6  ;;  %v2187_v54 = vld [vmem:[%s2257_s23 + $0x174] sm:$0xff]   ;;  %v2189_v56 = vld [vmem:[%s2257_s23 + $0x17c] sm:$0xff]   ;;  %v2191_v58 = vld [vmem:[%s2257_s23 + $0x184] sm:$0xff]  }
  0x24   : > { %1862 = vmatprep.subr.bf16.mxu0 %v2202_v1  ;;  %1930 = vmatprep.subr.bf16.mxu1 %v2202_v1  ;;  %v2192_v59 = vld [vmem:[%s2257_s23 + $0x128] ss:$0 sps:$4 sm:$0x33]   ;;  %v2193_v60 = vld [vmem:[%s2257_s23 + $0x18c] ss:$0 sps:$4 sm:$0x33]  }
  0x27   : > { %1863 = vmatpush3.bf16.msra.mxu0 %v2140_v7  ;;  %1931 = vmatpush3.bf16.msra.mxu1 %v2140_v7 }
  0x28   : > { %1864 = vmatprep.subr.bf16.mxu0 %v2202_v1  ;;  %1932 = vmatprep.subr.bf16.mxu1 %v2202_v1 }
  0x2b   : > { %1865 = vmatpush3.bf16.msra.mxu0 %v2141_v8  ;;  %1933 = vmatpush3.bf16.msra.mxu1 %v2141_v8 }
  0x2c   : > { %1986 = vmatprep.subr.bf16.mxu0 %v2202_v1  ;;  %2054 = vmatprep.subr.bf16.mxu1 %v2202_v1 }
  0x2e   : > { %1867 = vmatmul.mubr.bf16.vlgmr.msra.gmra.mrb[0].mxu0 %v2142_v9  ;;  %1935 = vmatmul.mubr.bf16.vlgmr.msra.gmra.mrb[0].mxu1 %v2143_v10 }
  0x2f   : > { %1987 = vmatpush3.bf16.msra.mxu0 %v2134_v0  ;;  %2055 = vmatpush3.bf16.msra.mxu1 %v2134_v0 }
  0x30   : > { %1870 = vmatprep.mubr.msk.bf16.mxu0 %vm2203_vm0, %v2202_v1  ;;  %1938 = vmatprep.mubr.msk.bf16.mxu1 %vm2203_vm0, %v2202_v1 }
  0x31   : > { %1988 = vmatprep.subr.bf16.mxu0 %v2202_v1  ;;  %2056 = vmatprep.subr.bf16.mxu1 %v2202_v1 }
  0x33   : > { %1989 = vmatpush3.bf16.msra.mxu0 %v2135_v2  ;;  %2057 = vmatpush3.bf16.msra.mxu1 %v2135_v2 }
  0x34   : > { %1990 = vmatprep.subr.bf16.mxu0 %v2202_v1  ;;  %2058 = vmatprep.subr.bf16.mxu1 %v2202_v1 }
  0x36   : > { %1871 = vmatmul.mubr.bf16.gmra.mrb[4].mxu0 %v2144_v11  ;;  %1939 = vmatmul.mubr.bf16.gmra.mrb[4].mxu1 %v2145_v12 }
  0x37   : > { %1874 = vmatprep.mubr.msk.bf16.mxu0 %vm2203_vm0, %v2202_v1  ;;  %1942 = vmatprep.mubr.msk.bf16.mxu1 %vm2203_vm0, %v2202_v1 }
  0x38   : > { %1991 = vmatpush3.bf16.msra.mxu0 %v2136_v3  ;;  %2059 = vmatpush3.bf16.msra.mxu1 %v2136_v3 }
  0x39   : > { %1992 = vmatprep.subr.bf16.mxu0 %v2202_v1  ;;  %2060 = vmatprep.subr.bf16.mxu1 %v2202_v1 }
  0x3c   : > { %1993 = vmatpush3.bf16.msra.mxu0 %v2137_v4  ;;  %2061 = vmatpush3.bf16.msra.mxu1 %v2137_v4 }
  0x3d   : > { %1994 = vmatprep.subr.bf16.mxu0 %v2202_v1  ;;  %2062 = vmatprep.subr.bf16.mxu1 %v2202_v1 }
  0x3e   : > { %1875 = vmatmul.mubr.bf16.gmra.mrb[8].mxu0 %v2146_v13  ;;  %1943 = vmatmul.mubr.bf16.gmra.mrb[8].mxu1 %v2147_v14 }
  0x3f   : > { %1878 = vmatprep.mubr.msk.bf16.mxu0 %vm2203_vm0, %v2202_v1  ;;  %1946 = vmatprep.mubr.msk.bf16.mxu1 %vm2203_vm0, %v2202_v1 }
  0x40   : > { %1995 = vmatpush3.bf16.msra.mxu0 %v2138_v5  ;;  %2063 = vmatpush3.bf16.msra.mxu1 %v2138_v5 }
  0x41   : > { %1996 = vmatprep.subr.bf16.mxu0 %v2202_v1  ;;  %2064 = vmatprep.subr.bf16.mxu1 %v2202_v1 }
  0x44   : > { %1997 = vmatpush3.bf16.msra.mxu0 %v2139_v6  ;;  %2065 = vmatpush3.bf16.msra.mxu1 %v2139_v6 }
  0x45   : > { %1998 = vmatprep.subr.bf16.mxu0 %v2202_v1  ;;  %2066 = vmatprep.subr.bf16.mxu1 %v2202_v1 }
  0x46   : > { %1879 = vmatmul.mubr.bf16.gmra.mrb[12].mxu0 %v2148_v15  ;;  %1947 = vmatmul.mubr.bf16.gmra.mrb[12].mxu1 %v2149_v16 }
  0x47   : > { %1882 = vmatprep.mubr.msk.bf16.mxu0 %vm2203_vm0, %v2202_v1  ;;  %1950 = vmatprep.mubr.msk.bf16.mxu1 %vm2203_vm0, %v2202_v1 }
  0x48   : > { %1999 = vmatpush3.bf16.msra.mxu0 %v2140_v7  ;;  %2067 = vmatpush3.bf16.msra.mxu1 %v2140_v7 }
  0x49   : > { %2000 = vmatprep.subr.bf16.mxu0 %v2202_v1  ;;  %2068 = vmatprep.subr.bf16.mxu1 %v2202_v1 }
  0x4c   : > { %2001 = vmatpush3.bf16.msra.mxu0 %v2141_v8  ;;  %2069 = vmatpush3.bf16.msra.mxu1 %v2141_v8 }
  0x4e   : > { %1883 = vmatmul.mubr.bf16.gmra.mrb[16].mxu0 %v2150_v17  ;;  %1951 = vmatmul.mubr.bf16.gmra.mrb[16].mxu1 %v2151_v18 }
  0x4f   : > { %1886 = vmatprep.mubr.msk.bf16.mxu0 %vm2203_vm0, %v2202_v1  ;;  %1954 = vmatprep.mubr.msk.bf16.mxu1 %vm2203_vm0, %v2202_v1 }
  0x56   : > { %1887 = vmatmul.mubr.bf16.gmra.mrb[20].mxu0 %v2152_v19  ;;  %1955 = vmatmul.mubr.bf16.gmra.mrb[20].mxu1 %v2153_v20 }
  0x57   : > { %1890 = vmatprep.mubr.msk.bf16.mxu0 %vm2203_vm0, %v2202_v1  ;;  %1958 = vmatprep.mubr.msk.bf16.mxu1 %vm2203_vm0, %v2202_v1 }
  0x5e   : > { %1891 = vmatmul.mubr.bf16.gmra.mrb[24].mxu0 %v2154_v21  ;;  %1959 = vmatmul.mubr.bf16.gmra.mrb[24].mxu1 %v2155_v22 }
  0x5f   : > { %1894 = vmatprep.mubr.msk.bf16.mxu0 %vm2203_vm0, %v2202_v1  ;;  %1962 = vmatprep.mubr.msk.bf16.mxu1 %vm2203_vm0, %v2202_v1 }
  0x66   : > { %1895 = vmatmul.mubr.bf16.gmra.mrb[28].mxu0 %v2156_v23  ;;  %1963 = vmatmul.mubr.bf16.gmra.mrb[28].mxu1 %v2157_v24 }
  0x67   : > { %1898 = vmatprep.mubr.msk.bf16.mxu0 %vm2203_vm0, %v2202_v1  ;;  %1966 = vmatprep.mubr.msk.bf16.mxu1 %vm2203_vm0, %v2202_v1 }
  0x6e   : > { %1899 = vmatmul.mubr.bf16.gmra.mrb[32].mxu0 %v2158_v25  ;;  %1967 = vmatmul.mubr.bf16.gmra.mrb[32].mxu1 %v2159_v26 }
  0x6f   : > { %1902 = vmatprep.mubr.msk.bf16.mxu0 %vm2203_vm0, %v2202_v1  ;;  %1970 = vmatprep.mubr.msk.bf16.mxu1 %vm2203_vm0, %v2202_v1 }
  0x76   : > { %1903 = vmatmul.mubr.bf16.gmra.mrb[36].mxu0 %v2160_v27  ;;  %1971 = vmatmul.mubr.bf16.gmra.mrb[36].mxu1 %v2161_v28 }
  0x77   : > { %1906 = vmatprep.mubr.msk.bf16.mxu0 %vm2203_vm0, %v2202_v1  ;;  %1974 = vmatprep.mubr.msk.bf16.mxu1 %vm2203_vm0, %v2202_v1 }
  0x7e   : > { %1907 = vmatmul.mubr.bf16.gmra.mrb[40].mxu0 %v2162_v29  ;;  %1975 = vmatmul.mubr.bf16.gmra.mrb[40].mxu1 %v2163_v30 }
  0x7f   : > { %1910 = vmatprep.mubr.msk.bf16.mxu0 %vm2203_vm0, %v2202_v1  ;;  %1978 = vmatprep.mubr.msk.bf16.mxu1 %vm2203_vm0, %v2202_v1 }
  0x86   : > { %1911 = vmatmul.mubr.bf16.gmra.mrb[44].mxu0 %v2164_v31  ;;  %1979 = vmatmul.mubr.bf16.gmra.mrb[44].mxu1 %v2165_v32 }
  0x87   : > { %1914 = vmatprep.mubr.msk.bf16.mxu0 %vm2203_vm0, %v2202_v1  ;;  %1982 = vmatprep.mubr.msk.bf16.mxu1 %vm2203_vm0, %v2202_v1 }
  0x8e   : > { %1915 = vmatmul.mubr.bf16.gmra.mrb[48].mxu0 %v2166_v33  ;;  %1983 = vmatmul.mubr.bf16.gmra.mrb[48].mxu1 %v2167_v34 }
  0x8f   : > { %2002 = vmatprep.mubr.msk.bf16.mxu0 %vm2203_vm0, %v2202_v1  ;;  %2070 = vmatprep.mubr.msk.bf16.mxu1 %vm2203_vm0, %v2202_v1 }
  0x96   : > { %2003 = vmatmul.mubr.bf16.vlgmr.msra.gmra.mrb[52].mxu0 %v2168_v35  ;;  %2071 = vmatmul.mubr.bf16.vlgmr.msra.gmra.mrb[52].mxu1 %v2169_v36 }
  0x97   : > { %2006 = vmatprep.mubr.msk.bf16.mxu0 %vm2203_vm0, %v2202_v1  ;;  %2074 = vmatprep.mubr.msk.bf16.mxu1 %vm2203_vm0, %v2202_v1 }
  0x9e   : > { %2007 = vmatmul.mubr.bf16.gmra.mrb[56].mxu0 %v2170_v37  ;;  %2075 = vmatmul.mubr.bf16.gmra.mrb[56].mxu1 %v2171_v38 }
  0x9f   : > { %2010 = vmatprep.mubr.msk.bf16.mxu0 %vm2203_vm0, %v2202_v1  ;;  %2078 = vmatprep.mubr.msk.bf16.mxu1 %vm2203_vm0, %v2202_v1 }
  0xa6   : > { %2011 = vmatmul.mubr.bf16.gmra.mrb[60].mxu0 %v2172_v39  ;;  %2079 = vmatmul.mubr.bf16.gmra.mrb[60].mxu1 %v2173_v40 }
  0xa7   : > { %2014 = vmatprep.mubr.msk.bf16.mxu0 %vm2203_vm0, %v2202_v1  ;;  %2082 = vmatprep.mubr.msk.bf16.mxu1 %vm2203_vm0, %v2202_v1 }
  0xae   : > { %2015 = vmatmul.mubr.bf16.gmra.mrb[64].mxu0 %v2174_v41  ;;  %2083 = vmatmul.mubr.bf16.gmra.mrb[64].mxu1 %v2175_v42 }
  0xaf   : > { %2018 = vmatprep.mubr.msk.bf16.mxu0 %vm2203_vm0, %v2202_v1  ;;  %2086 = vmatprep.mubr.msk.bf16.mxu1 %vm2203_vm0, %v2202_v1 }
  0xb6   : > { %2019 = vmatmul.mubr.bf16.gmra.mrb[68].mxu0 %v2176_v43  ;;  %2087 = vmatmul.mubr.bf16.gmra.mrb[68].mxu1 %v2177_v44 }
  0xb7   : > { %2022 = vmatprep.mubr.msk.bf16.mxu0 %vm2203_vm0, %v2202_v1  ;;  %2090 = vmatprep.mubr.msk.bf16.mxu1 %vm2203_vm0, %v2202_v1 }
  0xbe   : > { %2023 = vmatmul.mubr.bf16.gmra.mrb[72].mxu0 %v2178_v45  ;;  %2091 = vmatmul.mubr.bf16.gmra.mrb[72].mxu1 %v2179_v46 }
  0xbf   : > { %2026 = vmatprep.mubr.msk.bf16.mxu0 %vm2203_vm0, %v2202_v1  ;;  %2094 = vmatprep.mubr.msk.bf16.mxu1 %vm2203_vm0, %v2202_v1 }
  0xc6   : > { %2027 = vmatmul.mubr.bf16.gmra.mrb[76].mxu0 %v2180_v47  ;;  %2095 = vmatmul.mubr.bf16.gmra.mrb[76].mxu1 %v2181_v48 }
  0xc7   : > { %2030 = vmatprep.mubr.msk.bf16.mxu0 %vm2203_vm0, %v2202_v1  ;;  %2098 = vmatprep.mubr.msk.bf16.mxu1 %vm2203_vm0, %v2202_v1 }
  0xce   : > { %2031 = vmatmul.mubr.bf16.gmra.mrb[80].mxu0 %v2182_v49  ;;  %2099 = vmatmul.mubr.bf16.gmra.mrb[80].mxu1 %v2183_v50 }
  0xcf   : > { %2034 = vmatprep.mubr.msk.bf16.mxu0 %vm2203_vm0, %v2202_v1  ;;  %2102 = vmatprep.mubr.msk.bf16.mxu1 %vm2203_vm0, %v2202_v1 }
  0xd6   : > { %2035 = vmatmul.mubr.bf16.gmra.mrb[84].mxu0 %v2184_v51  ;;  %2103 = vmatmul.mubr.bf16.gmra.mrb[84].mxu1 %v2185_v52 }
  0xd7   : > { %2038 = vmatprep.mubr.msk.bf16.mxu0 %vm2203_vm0, %v2202_v1  ;;  %2106 = vmatprep.mubr.msk.bf16.mxu1 %vm2203_vm0, %v2202_v1 }
  0xde   : > { %2039 = vmatmul.mubr.bf16.gmra.mrb[88].mxu0 %v2186_v53  ;;  %2107 = vmatmul.mubr.bf16.gmra.mrb[88].mxu1 %v2187_v54 }
  0xdf   : > { %2042 = vmatprep.mubr.msk.bf16.mxu0 %vm2203_vm0, %v2202_v1  ;;  %2110 = vmatprep.mubr.msk.bf16.mxu1 %vm2203_vm0, %v2202_v1 }
  0xe6   : > { %2043 = vmatmul.mubr.bf16.gmra.mrb[92].mxu0 %v2188_v55  ;;  %2111 = vmatmul.mubr.bf16.gmra.mrb[92].mxu1 %v2189_v56 }
  0xe7   : > { %2046 = vmatprep.mubr.msk.bf16.mxu0 %vm2203_vm0, %v2202_v1  ;;  %2114 = vmatprep.mubr.msk.bf16.mxu1 %vm2203_vm0, %v2202_v1 }
  0xee   : > { %2047 = vmatmul.mubr.bf16.gmra.mrb[96].mxu0 %v2190_v57  ;;  %2115 = vmatmul.mubr.bf16.gmra.mrb[96].mxu1 %v2191_v58 }
  0xef   : > { %2050 = vmatprep.mubr.msk.bf16.mxu0 %vm2203_vm0, %v2202_v1  ;;  %2118 = vmatprep.mubr.msk.bf16.mxu1 %vm2203_vm0, %v2202_v1  ;;  %v2608_v1 = vld [vmem:[%s2731_s2] ss:$0 sm:$0xff] }
  0xf6   : > { %2051 = vmatmul.mubr.bf16.gmra.mrb[100].mxu0 %v2192_v59  ;;  %2119 = vmatmul.mubr.bf16.gmra.mrb[100].mxu1 %v2193_v60 }
 0x101   : > { %v2452_v61 = vpop.f32.mrb[0].mxu0  ;;  %v2454_v62 = vpop.f32.mrb[0].mxu1 }
 0x102   : > { %v711_v63 = vmax.f32 %v2452_v61, %v2454_v62  ;;  %v1868_v0 = vpop.f32.mrb[1].mxu0  ;;  %v1936_v2 = vpop.f32.mrb[1].mxu1 }
 0x103   : > { %v2458_v3 = vpop.f32.mrb[2].mxu0  ;;  %v2460_v4 = vpop.f32.mrb[2].mxu1 }
 0x104   : > { %v1869_v5 = vpop.f32.mrb[3].mxu0  ;;  %v1937_v6 = vpop.f32.mrb[3].mxu1 }
 0x109   : > { %v2464_v7 = vpop.f32.mrb[4].mxu0  ;;  %v2466_v8 = vpop.f32.mrb[4].mxu1 }
 0x10a   : > { %v1872_v10 = vpop.f32.mrb[5].mxu0  ;;  %v1940_v11 = vpop.f32.mrb[5].mxu1 }
 0x10b   : > { %v2470_v12 = vpop.f32.mrb[6].mxu0  ;;  %v2472_v13 = vpop.f32.mrb[6].mxu1 }
 0x10c   : > { %v1873_v15 = vpop.f32.mrb[7].mxu0  ;;  %v1941_v16 = vpop.f32.mrb[7].mxu1 }
 0x111   : > { %v2476_v17 = vpop.f32.mrb[8].mxu0  ;;  %v2478_v18 = vpop.f32.mrb[8].mxu1 }
 0x112   : > { %v1876_v20 = vpop.f32.mrb[9].mxu0  ;;  %v1944_v21 = vpop.f32.mrb[9].mxu1 }
 0x113   : > { %v2482_v22 = vpop.f32.mrb[10].mxu0  ;;  %v2484_v23 = vpop.f32.mrb[10].mxu1 }
 0x114   : > { %v1877_v25 = vpop.f32.mrb[11].mxu0  ;;  %v1945_v26 = vpop.f32.mrb[11].mxu1 }
 0x119   : > { %v2488_v27 = vpop.f32.mrb[12].mxu0  ;;  %v2490_v28 = vpop.f32.mrb[12].mxu1 }
 0x11a   : > { %v1880_v30 = vpop.f32.mrb[13].mxu0  ;;  %v1948_v31 = vpop.f32.mrb[13].mxu1 }
 0x11b   : > { %v2494_v32 = vpop.f32.mrb[14].mxu0  ;;  %v2496_v33 = vpop.f32.mrb[14].mxu1 }
 0x11c   : > { %v1881_v35 = vpop.f32.mrb[15].mxu0  ;;  %v1949_v36 = vpop.f32.mrb[15].mxu1 }
 0x121   : > { %v2500_v37 = vpop.f32.mrb[16].mxu0  ;;  %v2502_v38 = vpop.f32.mrb[16].mxu1 }
 0x122   : > { %v1884_v40 = vpop.f32.mrb[17].mxu0  ;;  %v1952_v41 = vpop.f32.mrb[17].mxu1 }
 0x123   : > { %v2506_v42 = vpop.f32.mrb[18].mxu0  ;;  %v2508_v43 = vpop.f32.mrb[18].mxu1 }
 0x124   : > { %v1885_v45 = vpop.f32.mrb[19].mxu0  ;;  %v1953_v46 = vpop.f32.mrb[19].mxu1 }
 0x129   : > { %v2512_v47 = vpop.f32.mrb[20].mxu0  ;;  %v2514_v48 = vpop.f32.mrb[20].mxu1 }
 0x12a   : > { %v1888_v50 = vpop.f32.mrb[21].mxu0  ;;  %v1956_v51 = vpop.f32.mrb[21].mxu1 }
 0x12b   : > { %v2518_v52 = vpop.f32.mrb[22].mxu0  ;;  %v2520_v53 = vpop.f32.mrb[22].mxu1 }
 0x12c   : > { %v1889_v55 = vpop.f32.mrb[23].mxu0  ;;  %v1957_v56 = vpop.f32.mrb[23].mxu1 }
 0x131   : > { %v2524_v57 = vpop.f32.mrb[24].mxu0  ;;  %v2526_v58 = vpop.f32.mrb[24].mxu1 }
 0x132   : > { %v1892_v60 = vpop.f32.mrb[25].mxu0  ;;  %v1960_v0 = vpop.f32.mrb[25].mxu1 }
 0x133   : > { %v2530_v2 = vpop.f32.mrb[26].mxu0  ;;  %v2532_v5 = vpop.f32.mrb[26].mxu1 }
 0x134   : > { %v1893_v10 = vpop.f32.mrb[27].mxu0  ;;  %v1961_v11 = vpop.f32.mrb[27].mxu1 }
 0x139   : > { %v2536_v15 = vpop.f32.mrb[28].mxu0  ;;  %v2538_v16 = vpop.f32.mrb[28].mxu1 }
 0x13a   : > { %v1896_v21 = vpop.f32.mrb[29].mxu0  ;;  %v1964_v25 = vpop.f32.mrb[29].mxu1 }
 0x13b   : > { %v2542_v26 = vpop.f32.mrb[30].mxu0  ;;  %v2544_v30 = vpop.f32.mrb[30].mxu1 }
 0x13c   : > { %v1897_v35 = vpop.f32.mrb[31].mxu0  ;;  %v1965_v36 = vpop.f32.mrb[31].mxu1 }
 0x141   : > { %v2548_v40 = vpop.f32.mrb[32].mxu0  ;;  %v2550_v41 = vpop.f32.mrb[32].mxu1 }
 0x142   : > { %v1900_v46 = vpop.f32.mrb[33].mxu0  ;;  %v1968_v50 = vpop.f32.mrb[33].mxu1 }
 0x143   : > { %v2554_v51 = vpop.f32.mrb[34].mxu0  ;;  %v2556_v55 = vpop.f32.mrb[34].mxu1 }
 0x144   : > { %v1901_v60 = vpop.f32.mrb[35].mxu0  ;;  %v1969_v0 = vpop.f32.mrb[35].mxu1 }
 0x149   : > { %v2560_v10 = vpop.f32.mrb[36].mxu0  ;;  %v2562_v11 = vpop.f32.mrb[36].mxu1 }
 0x14a   : > { %v1904_v25 = vpop.f32.mrb[37].mxu0  ;;  %v1972_v35 = vpop.f32.mrb[37].mxu1 }
 0x14b   : > { %v2566_v36 = vpop.f32.mrb[38].mxu0  ;;  %v2568_v46 = vpop.f32.mrb[38].mxu1 }
 0x14c   : > { %v1905_v45 = vpop.f32.mrb[39].mxu0  ;;  %v1973_v56 = vpop.f32.mrb[39].mxu1 }
 0x151   : > { %v2572_v60 = vpop.f32.mrb[40].mxu0  ;;  %v2574_v0 = vpop.f32.mrb[40].mxu1 }
 0x152   : > { %v1908_v20 = vpop.f32.mrb[41].mxu0  ;;  %v1976_v21 = vpop.f32.mrb[41].mxu1 }
 0x153   : > { %v2578_v25 = vpop.f32.mrb[42].mxu0  ;;  %v2580_v35 = vpop.f32.mrb[42].mxu1 }
 0x154   : > { %v1909_v59 = vpop.f32.mrb[43].mxu0  ;;  %v1977_v50 = vpop.f32.mrb[43].mxu1 }
 0x159   : > { %v2584_v45 = vpop.f32.mrb[44].mxu0  ;;  %v2586_v56 = vpop.f32.mrb[44].mxu1 }
 0x15a   : > { %v1912_v49 = vpop.f32.mrb[45].mxu0  ;;  %v1980_v31 = vpop.f32.mrb[45].mxu1 }
 0x15b   : > { %v2590_v20 = vpop.f32.mrb[46].mxu0  ;;  %v2592_v21 = vpop.f32.mrb[46].mxu1 }
 0x15c   : > { %2736 = vst [vmem:[#allocation2_spill] sm:$0xff] %v2592_v21  ;;  %v1913_v39 = vpop.f32.mrb[47].mxu0  ;;  %v1981_v6 = vpop.f32.mrb[47].mxu1 }
 0x161   : > { %v2596_v59 = vpop.f32.mrb[48].mxu0  ;;  %v2598_v50 = vpop.f32.mrb[48].mxu1 }
 0x162   : > { %2737 = vst [vmem:[#allocation3_spill] sm:$0xff] %v2596_v59  ;;  %2738 = vst [vmem:[#allocation4_spill] sm:$0xff] %v2598_v50  ;;  %v1916_v29 = vpop.f32.mrb[49].mxu0  ;;  %v1984_v54 = vpop.f32.mrb[49].mxu1  ;;  %v2740_v59 = vmax.f32 %v2464_v7, %v2466_v8 }
 0x163   : > { %v470_v49 = vpop.f32.mrb[50].mxu0  ;;  %v708_v31 = vpop.f32.mrb[50].mxu1 }
 0x164   : > { %v1917_v24 = vpop.f32.mrb[51].mxu0  ;;  %v1985_v19 = vpop.f32.mrb[51].mxu1 }
 0x165   : > { %v2739_v24 = vmax.f32 %v2458_v3, %v2460_v4 }
 0x169   : > { %v872_v14 = vpop.f32.mrb[52].mxu0  ;;  %v1135_v9 = vpop.f32.mrb[52].mxu1 }
 0x16a   : > { %v974_v39 = vmax.f32 %v711_v63, %v872_v14  ;;  %v2004_v6 = vpop.f32.mrb[53].mxu0  ;;  %v2072_v44 = vpop.f32.mrb[53].mxu1 }
 0x16b   : > { %v875_v29 = vpop.f32.mrb[54].mxu0  ;;  %v1138_v54 = vpop.f32.mrb[54].mxu1 }
 0x16c   : > { %v1237_v49 = vmax.f32 %v974_v39, %v1135_v9  ;;  %v975_v19 = vmax.f32 %v2739_v24, %v875_v29  ;;  %v2005_v31 = vpop.f32.mrb[55].mxu0  ;;  %v2073_v34 = vpop.f32.mrb[55].mxu1 }
 0x16e   : > { %v1269_v50 = vadd.f32 %v2608_v1, %v1237_v49  ;;  %v1238_v61 = vmax.f32 %v975_v19, %v1138_v54 }
 0x170   : > { %v1270_v62 = vadd.f32 %v2608_v1, %v1238_v61  ;;  %v1294_v44 = vmax.f32 %v1269_v50, 0.0  ;;  %v2741_v50 = vmax.f32 %v2470_v12, %v2472_v13 }
 0x171   : > { %v880_v63 = vpop.f32.mrb[56].mxu0  ;;  %v1143_v14 = vpop.f32.mrb[56].mxu1 }
 0x172   : > { %v1295_v6 = vmax.f32 %v1270_v62, 0.0  ;;  %v976_v9 = vmax.f32 %v2740_v59, %v880_v63  ;;  %v2008_v39 = vpop.f32.mrb[57].mxu0  ;;  %v2076_v21 = vpop.f32.mrb[57].mxu1  ;;  %v2742_v62 = vmax.f32 %v2476_v17, %v2478_v18 }
 0x173   : > { %v883_v3 = vpop.f32.mrb[58].mxu0  ;;  %v1146_v4 = vpop.f32.mrb[58].mxu1  ;;  %v2743_v39 = vmax.f32 %v2482_v22, %v2484_v23 }
 0x174   : > { %v1698_v34 = vpack.c.bf16 %v1295_v6, %v1294_v44  ;;  %v1239_v29 = vmax.f32 %v976_v9, %v1143_v14  ;;  %v977_v54 = vmax.f32 %v2741_v50, %v883_v3  ;;  %v2009_v49 = vpop.f32.mrb[59].mxu0  ;;  %v2077_v24 = vpop.f32.mrb[59].mxu1 }
 0x176   : > { %1699 = vst [vmem:[%s2622_s14] sm:$0xff] %v1698_v34   ;;  %v1271_v7 = vadd.f32 %v2608_v1, %v1239_v29  ;;  %v1240_v8 = vmax.f32 %v977_v54, %v1146_v4 }
 0x178   : > { %v1272_v21 = vadd.f32 %v2608_v1, %v1240_v8  ;;  %v1296_v31 = vmax.f32 %v1271_v7, 0.0  ;;  %v2744_v7 = vmax.f32 %v2488_v27, %v2490_v28 }
 0x179   : > { %v888_v59 = vpop.f32.mrb[60].mxu0  ;;  %v1151_v19 = vpop.f32.mrb[60].mxu1 }
 0x17a   : > { %v1297_v61 = vmax.f32 %v1272_v21, 0.0  ;;  %v978_v63 = vmax.f32 %v2742_v62, %v888_v59  ;;  %v2012_v14 = vpop.f32.mrb[61].mxu0  ;;  %v2080_v12 = vpop.f32.mrb[61].mxu1 }
 0x17b   : > { %v891_v13 = vpop.f32.mrb[62].mxu0  ;;  %v1154_v44 = vpop.f32.mrb[62].mxu1 }
 0x17c   : > { %v1703_v6 = vpack.c.bf16 %v1297_v61, %v1296_v31  ;;  %v1241_v9 = vmax.f32 %v978_v63, %v1151_v19  ;;  %v979_v3 = vmax.f32 %v2743_v39, %v891_v13  ;;  %v2013_v4 = vpop.f32.mrb[63].mxu0  ;;  %v2081_v34 = vpop.f32.mrb[63].mxu1  ;;  %v2745_v61 = vmax.f32 %v2494_v32, %v2496_v33 }
 0x17d   : > { %v2746_v39 = vmax.f32 %v2500_v37, %v2502_v38 }
 0x17e   : > { %1755 = vst [vmem:[%s2622_s14 + $0x8] sm:$0xff] %v1703_v6   ;;  %v1273_v29 = vadd.f32 %v2608_v1, %v1241_v9  ;;  %v1242_v50 = vmax.f32 %v979_v3, %v1154_v44 }
 0x180   : > { %v1274_v17 = vadd.f32 %v2608_v1, %v1242_v50  ;;  %v1298_v49 = vmax.f32 %v1273_v29, 0.0 }
 0x181   : > { %v896_v18 = vpop.f32.mrb[64].mxu0  ;;  %v1159_v54 = vpop.f32.mrb[64].mxu1 }
 0x182   : > { %v1299_v24 = vmax.f32 %v1274_v17, 0.0  ;;  %v980_v8 = vmax.f32 %v2744_v7, %v896_v18  ;;  %v2016_v21 = vpop.f32.mrb[65].mxu0  ;;  %v2084_v22 = vpop.f32.mrb[65].mxu1  ;;  %v2747_v17 = vmax.f32 %v2506_v42, %v2508_v43 }
 0x183   : > { %v899_v23 = vpop.f32.mrb[66].mxu0  ;;  %v1162_v59 = vpop.f32.mrb[66].mxu1 }
 0x184   : > { %v1708_v19 = vpack.c.bf16 %v1299_v24, %v1298_v49  ;;  %v1243_v31 = vmax.f32 %v980_v8, %v1159_v54  ;;  %v981_v62 = vmax.f32 %v2745_v61, %v899_v23  ;;  %v2017_v63 = vpop.f32.mrb[67].mxu0  ;;  %v2085_v14 = vpop.f32.mrb[67].mxu1  ;;  %v2748_v23 = vmax.f32 %v2512_v47, %v2514_v48 }
 0x185   : > { %v2749_v63 = vmax.f32 %v2518_v52, %v2520_v53 }
 0x186   : > { %1756 = vst [vmem:[%s2622_s14 + $0x10] sm:$0xff] %v1708_v19   ;;  %v1275_v12 = vadd.f32 %v2608_v1, %v1243_v31  ;;  %v1244_v13 = vmax.f32 %v981_v62, %v1162_v59 }
 0x188   : > { %v1276_v27 = vadd.f32 %v2608_v1, %v1244_v13  ;;  %v1300_v6 = vmax.f32 %v1275_v12, 0.0 }
 0x189   : > { %v904_v28 = vpop.f32.mrb[68].mxu0  ;;  %v1167_v44 = vpop.f32.mrb[68].mxu1 }
 0x18a   : > { %v1301_v9 = vmax.f32 %v1276_v27, 0.0  ;;  %v982_v3 = vmax.f32 %v2746_v39, %v904_v28  ;;  %v2020_v4 = vpop.f32.mrb[69].mxu0  ;;  %v2088_v32 = vpop.f32.mrb[69].mxu1  ;;  %v2750_v39 = vmax.f32 %v2524_v57, %v2526_v58 }
 0x18b   : > { %v907_v33 = vpop.f32.mrb[70].mxu0  ;;  %v1170_v34 = vpop.f32.mrb[70].mxu1 }
 0x18c   : > { %v1713_v29 = vpack.c.bf16 %v1301_v9, %v1300_v6  ;;  %v1245_v50 = vmax.f32 %v982_v3, %v1167_v44  ;;  %v983_v18 = vmax.f32 %v2747_v17, %v907_v33  ;;  %v2021_v54 = vpop.f32.mrb[71].mxu0  ;;  %v2089_v49 = vpop.f32.mrb[71].mxu1 }
 0x18e   : > { %1757 = vst [vmem:[%s2622_s14 + $0x18] sm:$0xff] %v1713_v29   ;;  %v1277_v24 = vadd.f32 %v2608_v1, %v1245_v50  ;;  %v1246_v7 = vmax.f32 %v983_v18, %v1170_v34  ;;  %v2751_v29 = vmax.f32 %v2530_v2, %v2532_v5 }
 0x190   : > { %v1278_v37 = vadd.f32 %v2608_v1, %v1246_v7  ;;  %v1302_v21 = vmax.f32 %v1277_v24, 0.0 }
 0x191   : > { %v912_v38 = vpop.f32.mrb[72].mxu0  ;;  %v1175_v8 = vpop.f32.mrb[72].mxu1 }
 0x192   : > { %v1303_v22 = vmax.f32 %v1278_v37, 0.0  ;;  %v984_v59 = vmax.f32 %v2748_v23, %v912_v38  ;;  %v2024_v19 = vpop.f32.mrb[73].mxu0  ;;  %v2092_v42 = vpop.f32.mrb[73].mxu1  ;;  %v2752_v38 = vmax.f32 %v2536_v15, %v2538_v16 }
 0x193   : > { %v915_v43 = vpop.f32.mrb[74].mxu0  ;;  %v1178_v31 = vpop.f32.mrb[74].mxu1  ;;  %v2753_v19 = vmax.f32 %v2542_v26, %v2544_v30 }
 0x194   : > { %v1718_v61 = vpack.c.bf16 %v1303_v22, %v1302_v21  ;;  %v1247_v62 = vmax.f32 %v984_v59, %v1175_v8  ;;  %v985_v14 = vmax.f32 %v2749_v63, %v915_v43  ;;  %v2025_v12 = vpop.f32.mrb[75].mxu0  ;;  %v2093_v13 = vpop.f32.mrb[75].mxu1 }
 0x195   : > { %v2754_v13 = vmax.f32 %v2548_v40, %v2550_v41 }
 0x196   : > { %1758 = vst [vmem:[%s2622_s14 + $0x20] sm:$0xff] %v1718_v61   ;;  %v1279_v27 = vadd.f32 %v2608_v1, %v1247_v62  ;;  %v1248_v28 = vmax.f32 %v985_v14, %v1178_v31 }
 0x198   : > { %v1280_v47 = vadd.f32 %v2608_v1, %v1248_v28  ;;  %v1304_v6 = vmax.f32 %v1279_v27, 0.0 }
 0x199   : > { %v920_v48 = vpop.f32.mrb[76].mxu0  ;;  %v1183_v44 = vpop.f32.mrb[76].mxu1 }
 0x19a   : > { %v1305_v9 = vmax.f32 %v1280_v47, 0.0  ;;  %v986_v3 = vmax.f32 %v2750_v39, %v920_v48  ;;  %v2028_v4 = vpop.f32.mrb[77].mxu0  ;;  %v2096_v52 = vpop.f32.mrb[77].mxu1 }
 0x19b   : > { %v923_v53 = vpop.f32.mrb[78].mxu0  ;;  %v1186_v32 = vpop.f32.mrb[78].mxu1 }
 0x19c   : > { %v1723_v33 = vpack.c.bf16 %v1305_v9, %v1304_v6  ;;  %v1249_v34 = vmax.f32 %v986_v3, %v1183_v44  ;;  %v987_v50 = vmax.f32 %v2751_v29, %v923_v53  ;;  %v2029_v17 = vpop.f32.mrb[79].mxu0  ;;  %v2097_v18 = vpop.f32.mrb[79].mxu1  ;;  %v2755_v6 = vmax.f32 %v2554_v51, %v2556_v55 }
 0x19e   : > { %1759 = vst [vmem:[%s2622_s14 + $0x28] sm:$0xff] %v1723_v33   ;;  %v1281_v54 = vadd.f32 %v2608_v1, %v1249_v34  ;;  %v1250_v49 = vmax.f32 %v987_v50, %v1186_v32  ;;  %v2756_v34 = vmax.f32 %v2560_v10, %v2562_v11 }
 0x1a0   : > { %v1282_v57 = vadd.f32 %v2608_v1, %v1250_v49  ;;  %v1306_v7 = vmax.f32 %v1281_v54, 0.0  ;;  %v2757_v49 = vmax.f32 %v2566_v36, %v2568_v46 }
 0x1a1   : > { %v928_v58 = vpop.f32.mrb[80].mxu0  ;;  %v1191_v24 = vpop.f32.mrb[80].mxu1 }
 0x1a2   : > { %v1307_v37 = vmax.f32 %v1282_v57, 0.0  ;;  %v988_v8 = vmax.f32 %v2752_v38, %v928_v58  ;;  %v2032_v21 = vpop.f32.mrb[81].mxu0  ;;  %v2100_v2 = vpop.f32.mrb[81].mxu1 }
 0x1a3   : > { %v931_v5 = vpop.f32.mrb[82].mxu0  ;;  %v1194_v22 = vpop.f32.mrb[82].mxu1  ;;  %v2758_v2 = vmax.f32 %v2572_v60, %v2574_v0 }
 0x1a4   : > { %v1728_v23 = vpack.c.bf16 %v1307_v37, %v1306_v7  ;;  %v1251_v59 = vmax.f32 %v988_v8, %v1191_v24  ;;  %v989_v42 = vmax.f32 %v2753_v19, %v931_v5  ;;  %v2033_v43 = vpop.f32.mrb[83].mxu0  ;;  %v2101_v31 = vpop.f32.mrb[83].mxu1 }
 0x1a6   : > { %1760 = vst [vmem:[%s2622_s14 + $0x30] sm:$0xff] %v1728_v23   ;;  %v1283_v61 = vadd.f32 %v2608_v1, %v1251_v59  ;;  %v1252_v62 = vmax.f32 %v989_v42, %v1194_v22  ;;  %v2759_v42 = vmax.f32 %v2578_v25, %v2580_v35 }
 0x1a8   : > { %v1284_v15 = vadd.f32 %v2608_v1, %v1252_v62  ;;  %v1308_v14 = vmax.f32 %v1283_v61, 0.0 }
 0x1a9   : > { %v936_v16 = vpop.f32.mrb[84].mxu0  ;;  %v1199_v63 = vpop.f32.mrb[84].mxu1 }
 0x1aa   : > { %v1309_v12 = vmax.f32 %v1284_v15, 0.0  ;;  %v990_v27 = vmax.f32 %v2754_v13, %v936_v16  ;;  %v2036_v28 = vpop.f32.mrb[85].mxu0  ;;  %v2104_v26 = vpop.f32.mrb[85].mxu1 }
 0x1ab   : > { %v939_v30 = vpop.f32.mrb[86].mxu0  ;;  %v1202_v47 = vpop.f32.mrb[86].mxu1 }
 0x1ac   : > { %v1733_v48 = vpack.c.bf16 %v1309_v12, %v1308_v14  ;;  %v1253_v44 = vmax.f32 %v990_v27, %v1199_v63  ;;  %v991_v9 = vmax.f32 %v2755_v6, %v939_v30  ;;  %v2037_v39 = vpop.f32.mrb[87].mxu0  ;;  %v2105_v3 = vpop.f32.mrb[87].mxu1  ;;  %v2760_v12 = vmax.f32 %v2584_v45, %v2586_v56 }
 0x1ae   : > { %1761 = vst [vmem:[%s2622_s14 + $0x38] sm:$0xff] %v1733_v48   ;;  %v1285_v4 = vadd.f32 %v2608_v1, %v1253_v44  ;;  %v1254_v52 = vmax.f32 %v991_v9, %v1202_v47  ;;  %v2761_v47 = vld [vmem:[#allocation2_spill] sm:$0xff] }
 0x1af   : > { %v2762_v48 = vmax.f32 %v2590_v20, %v2761_v47 }
 0x1b0   : > { %v1286_v40 = vadd.f32 %v2608_v1, %v1254_v52  ;;  %v1310_v32 = vmax.f32 %v1285_v4, 0.0 }
 0x1b1   : > { %v944_v41 = vpop.f32.mrb[88].mxu0  ;;  %v1207_v53 = vpop.f32.mrb[88].mxu1 }
 0x1b2   : > { %v1311_v33 = vmax.f32 %v1286_v40, 0.0  ;;  %v992_v29 = vmax.f32 %v2756_v34, %v944_v41  ;;  %v2040_v50 = vpop.f32.mrb[89].mxu0  ;;  %v2108_v51 = vpop.f32.mrb[89].mxu1  ;;  %v2763_v41 = vld [vmem:[#allocation3_spill] sm:$0xff] }
 0x1b3   : > { %v947_v55 = vpop.f32.mrb[90].mxu0  ;;  %v1210_v17 = vpop.f32.mrb[90].mxu1 }
 0x1b4   : > { %v1738_v18 = vpack.c.bf16 %v1311_v33, %v1310_v32  ;;  %v1255_v54 = vmax.f32 %v992_v29, %v1207_v53  ;;  %v993_v57 = vmax.f32 %v2757_v49, %v947_v55  ;;  %v2041_v58 = vpop.f32.mrb[91].mxu0  ;;  %v2109_v24 = vpop.f32.mrb[91].mxu1  ;;  %v2764_v53 = vld [vmem:[#allocation4_spill] sm:$0xff] }
 0x1b5   : > { %v2765_v32 = vmax.f32 %v2763_v41, %v2764_v53 }
 0x1b6   : > { %1762 = vst [vmem:[%s2622_s14 + $0x40] sm:$0xff] %v1738_v18   ;;  %v1287_v7 = vadd.f32 %v2608_v1, %v1255_v54  ;;  %v1256_v37 = vmax.f32 %v993_v57, %v1210_v17 }
 0x1b8   : > { %v1288_v10 = vadd.f32 %v2608_v1, %v1256_v37  ;;  %v1312_v8 = vmax.f32 %v1287_v7, 0.0 }
 0x1b9   : > { %v952_v11 = vpop.f32.mrb[92].mxu0  ;;  %v1215_v38 = vpop.f32.mrb[92].mxu1 }
 0x1ba   : > { %v1313_v21 = vmax.f32 %v1288_v10, 0.0  ;;  %v994_v5 = vmax.f32 %v2758_v2, %v952_v11  ;;  %v2044_v22 = vpop.f32.mrb[93].mxu0  ;;  %v2112_v36 = vpop.f32.mrb[93].mxu1 }
 0x1bb   : > { %v955_v46 = vpop.f32.mrb[94].mxu0  ;;  %v1218_v23 = vpop.f32.mrb[94].mxu1 }
 0x1bc   : > { %v1743_v59 = vpack.c.bf16 %v1313_v21, %v1312_v8  ;;  %v1257_v19 = vmax.f32 %v994_v5, %v1215_v38  ;;  %v995_v43 = vmax.f32 %v2759_v42, %v955_v46  ;;  %v2045_v31 = vpop.f32.mrb[95].mxu0  ;;  %v2113_v61 = vpop.f32.mrb[95].mxu1 }
 0x1be   : > { %1763 = vst [vmem:[%s2622_s14 + $0x48] sm:$0xff] %v1743_v59   ;;  %v1289_v62 = vadd.f32 %v2608_v1, %v1257_v19  ;;  %v1258_v15 = vmax.f32 %v995_v43, %v1218_v23 }
 0x1c0   : > { %v1290_v60 = vadd.f32 %v2608_v1, %v1258_v15  ;;  %v1314_v63 = vmax.f32 %v1289_v62, 0.0 }
 0x1c1   : > { %v960_v0 = vpop.f32.mrb[96].mxu0  ;;  %v1223_v16 = vpop.f32.mrb[96].mxu1 }
 0x1c2   : > { %v1315_v14 = vmax.f32 %v1290_v60, 0.0  ;;  %v996_v13 = vmax.f32 %v2760_v12, %v960_v0  ;;  %v2048_v27 = vpop.f32.mrb[97].mxu0  ;;  %v2116_v25 = vpop.f32.mrb[97].mxu1 }
 0x1c3   : > { %v963_v35 = vpop.f32.mrb[98].mxu0  ;;  %v1226_v28 = vpop.f32.mrb[98].mxu1 }
 0x1c4   : > { %v1748_v26 = vpack.c.bf16 %v1315_v14, %v1314_v63  ;;  %v1259_v30 = vmax.f32 %v996_v13, %v1223_v16  ;;  %v997_v44 = vmax.f32 %v2762_v48, %v963_v35  ;;  %v2049_v6 = vpop.f32.mrb[99].mxu0  ;;  %v2117_v9 = vpop.f32.mrb[99].mxu1 }
 0x1c6   : > { %1764 = vst [vmem:[%s2622_s14 + $0x50] sm:$0xff] %v1748_v26   ;;  %v1291_v39 = vadd.f32 %v2608_v1, %v1259_v30  ;;  %v1260_v3 = vmax.f32 %v997_v44, %v1226_v28 }
 0x1c8   : > { %v1292_v45 = vadd.f32 %v2608_v1, %v1260_v3  ;;  %v1316_v52 = vmax.f32 %v1291_v39, 0.0 }
 0x1c9   : > { %v968_v56 = vpop.f32.mrb[100].mxu0  ;;  %v1231_v4 = vpop.f32.mrb[100].mxu1 }
 0x1ca   : > { %v1317_v40 = vmax.f32 %v1292_v45, 0.0  ;;  %v998_v33 = vmax.f32 %v2765_v32, %v968_v56  ;;  %v2052_v20 = vpop.f32.mrb[101].mxu0  ;;  %v2120_v34 = vpop.f32.mrb[101].mxu1 }
 0x1cb   : > { %v971_v29 = vpop.f32.mrb[102].mxu0  ;;  %v1234_v50 = vpop.f32.mrb[102].mxu1 }
 0x1cc   : > { %v1753_v51 = vpack.c.bf16 %v1317_v40, %v1316_v52  ;;  %v1261_v55 = vmax.f32 %v998_v33, %v1231_v4  ;;  %v2053_v17 = vpop.f32.mrb[103].mxu0  ;;  %v2121_v18 = vpop.f32.mrb[103].mxu1 }
 0x1ce   : > { %1765 = vst [vmem:[%s2622_s14 + $0x58] sm:$0xff] %v1753_v51   ;;  %v1293_v54 = vadd.f32 %v2608_v1, %v1261_v55 }
 0x1d0   : > { %v1318_v49 = vmax.f32 %v1293_v54, 0.0 }
 0x1d2   : > { %v1694_v57 = vpack.c.bf16 %v1318_v49, %v1318_v49 }
 0x1d4   : > { %1444 = vst [vmem:[%s2622_s14 + $0x60] sm:$0x3] %v1694_v57 }
 0x1d5 PF: > { %s13_s12 = sadd.s32 1, %s2200_s12  }
 0x1d6   : > { %p10_p4 = scmp.ge.s32.totalorder %s13_s12, 4  }
 0x1d8   :  { %12 = sbr.rel (!%p10_p4) target bundleno = 1 (0x1), region = 65 }

// kernel: lenet_forward.4
= control target key start
LH: loop header
LB: loop body
LE: loop exit
PB: predicated region body
PF: predicated region fallthrough
CT: control target
= control target key end

     0   :  { %s961_s12 = smov 0   ;;  %s1093_s0 = inlined_call_operand.vmem [shape: bf16[2,4,25,256], index: 0, kind: input, shape index: {}]   ;;  %s1094_s1 = inlined_call_operand.vmem [shape: bf16[256,128], index: 1, kind: input, shape index: {}]   ;;  %s1095_s2 = inlined_call_operand.vmem [shape: f32[1,128], index: 2, kind: input, shape index: {}]   ;;  %s1096_s3 = inlined_call_operand.vmem [shape: bf16[2,25,128], index: 3, kind: output, shape index: {}]  }
   0x1 LB: > { %s702_s13 = sadd.s32 4294967295, %s939_s12   ;;  %p706_p0 = scmp.ge.s32.totalorder %s939_s12, 1  ;;  %s939_s12 = sphi %s961_s12, %s13_s12  }
   0x2   : > { %p137_p1 = scmp.lt.s32.totalorder %s939_s12, 3 }
   0x4   : > { %p138_p2 = pnand %p706_p0, %p137_p1 }
   0x5   : > { %v893_v0 = vld [vmem:[%s1094_s1 + $0x40] sm:$0xff] (!%p138_p2)   ;;  %v895_v2 = vld [vmem:[%s1094_s1 + $0x48] sm:$0xff] (!%p138_p2)   ;;  %p161_p3 = scmp.lt.s32.totalorder (!%p138_p2), %s702_s13, 1  ;;  %v990_v4 = vld [vmem:[%s1094_s1 + $0x50] sm:$0xff] (!%p138_p2)   ;;  %vm641_vm0 = vcmask (!%p138_p2), 1040384  }
   0x6   : > { %141 = sbr.rel (%p138_p2) target bundleno = 307 (0x133), region = 32  ;;  %v975_v1 = vld [vmem:[%s1094_s1] sm:$0xff] (!%p138_p2)   ;;  %773 = vmatprep.subr.bf16.mxu0 (!%p138_p2), %v893_v0  ;;  %801 = vmatprep.subr.bf16.mxu1 (!%p138_p2), %v893_v0  ;;  %v985_v3 = vld [vmem:[%s1094_s1 + $0x8] sm:$0xff] (!%p138_p2)   ;;  %v997_v5 = vld [vmem:[%s1094_s1 + $0x10] sm:$0xff] (!%p138_p2)   ;;  %vm642_vm1 = vsmask.f32 (!%p138_p2), 256 }
   0x7   : > { %774 = vmatpush3.bf16.msra.mxu0 (!%p138_p2), %v975_v1  ;;  %802 = vmatpush3.bf16.msra.mxu1 (!%p138_p2), %v975_v1  ;;  %v1006_v6 = vld [vmem:[%s1094_s1 + $0x58] sm:$0xff] (!%p138_p2)   ;;  %v1021_v8 = vld [vmem:[%s1094_s1 + $0x60] sm:$0xff] (!%p138_p2)   ;;  %v903_v10 = vld [vmem:[%s1094_s1 + $0x68] sm:$0xff] (!%p138_p2)  }
   0x8   : > { %775 = vmatprep.subr.bf16.mxu0 (!%p138_p2), %v895_v2  ;;  %803 = vmatprep.subr.bf16.mxu1 (!%p138_p2), %v895_v2  ;;  %v1013_v7 = vld [vmem:[%s1094_s1 + $0x18] sm:$0xff] (!%p138_p2)   ;;  %v902_v9 = vld [vmem:[%s1094_s1 + $0x20] sm:$0xff] (!%p138_p2)   ;;  %v904_v13 = vld [vmem:[%s1094_s1 + $0x28] sm:$0xff] (!%p138_p2)  }
   0x9   : > { %v905_v14 = vld [vmem:[%s1094_s1 + $0x70] sm:$0xff] (!%p138_p2)   ;;  %v907_v16 = vld [vmem:[%s1094_s1 + $0x78] sm:$0xff] (!%p138_p2)   ;;  %vm643_vm2 = vmand (!%p138_p2), %vm641_vm0, %vm642_vm1 }
   0xa   : > { %v906_v15 = vld [vmem:[%s1094_s1 + $0x30] sm:$0xff] (!%p138_p2)   ;;  %v908_v17 = vld [vmem:[%s1094_s1 + $0x38] sm:$0xff] (!%p138_p2)  }
   0xb   : > { %776 = vmatpush3.bf16.msra.mxu0 (!%p138_p2), %v985_v3  ;;  %804 = vmatpush3.bf16.msra.mxu1 (!%p138_p2), %v985_v3 }
   0xc   : > { %777 = vmatprep.subr.bf16.mxu0 (!%p138_p2), %v990_v4  ;;  %805 = vmatprep.subr.bf16.mxu1 (!%p138_p2), %v990_v4 }
   0xd   : > { %s1098_s13 = smov (!%p161_p3, %s702_s13), 1 }
   0xe   : > { %s762_s30 = sshll.u32 %s1098_s13, 7  ;;  %s763_s27 = sshll.u32 %s1098_s13, 4 }
   0xf   : > { %778 = vmatpush3.bf16.msra.mxu0 %v997_v5  ;;  %806 = vmatpush3.bf16.msra.mxu1 %v997_v5  ;;  %s1026_s8 = scalar_lea.vmem %s1093_s0, %s762_s30  ;;  %s170_s30 = scalar_lea.vmem %s1096_s3, %s763_s27 }
  0x10   : > { %779 = vmatprep.subr.bf16.mxu0 %v1006_v6  ;;  %807 = vmatprep.subr.bf16.mxu1 %v1006_v6  ;;  %v911_v11 = vld [vmem:[%s1026_s8 + $0x4] ss:$8 sps:$4 sm:$0xff]   ;;  %v909_v18 = vld [vmem:[%s1026_s8] ss:$8 sps:$4 sm:$0xff]  }
  0x11   : > { %v914_v12 = vld [vmem:[%s1026_s8 + $0x24] ss:$8 sps:$4 sm:$0xff]   ;;  %356 = vmatprep.mubr.bf16.mxu0 %v911_v11  ;;  %v912_v19 = vld [vmem:[%s1026_s8 + $0x20] ss:$8 sps:$4 sm:$0xff]  }
  0x12   : > { %430 = vmatprep.mubr.bf16.mxu1 %v914_v12  ;;  %v915_v20 = vld [vmem:[%s1026_s8 + $0x14] ss:$8 sps:$4 sm:$0x1f]   ;;  %v919_v22 = vld [vmem:[%s1026_s8 + $0x10] ss:$8 sps:$4 sm:$0x1f]  }
  0x13   : > { %780 = vmatpush3.bf16.msra.mxu0 %v1013_v7  ;;  %808 = vmatpush3.bf16.msra.mxu1 %v1013_v7  ;;  %v917_v21 = vld [vmem:[%s1026_s8 + $0x34] ss:$8 sps:$4 sm:$0x1f]   ;;  %v920_v23 = vld [vmem:[%s1026_s8 + $0x30] ss:$8 sps:$4 sm:$0x1f]  }
  0x14   : > { %781 = vmatprep.subr.bf16.mxu0 %v1021_v8  ;;  %809 = vmatprep.subr.bf16.mxu1 %v1021_v8  ;;  %v923_v24 = vld [vmem:[%s1026_s8 + $0x44] ss:$8 sps:$4 sm:$0xff]   ;;  %v921_v26 = vld [vmem:[%s1026_s8 + $0x40] ss:$8 sps:$4 sm:$0xff]  }
  0x15   : > { %v926_v25 = vld [vmem:[%s1026_s8 + $0x64] ss:$8 sps:$4 sm:$0xff]   ;;  %v924_v27 = vld [vmem:[%s1026_s8 + $0x60] ss:$8 sps:$4 sm:$0xff]  }
  0x16   : > { %v927_v28 = vld [vmem:[%s1026_s8 + $0x54] ss:$8 sps:$4 sm:$0x1f]   ;;  %v931_v30 = vld [vmem:[%s1026_s8 + $0x50] ss:$8 sps:$4 sm:$0x1f]  }
  0x17   : > { %782 = vmatpush3.bf16.msra.mxu0 %v902_v9  ;;  %810 = vmatpush3.bf16.msra.mxu1 %v902_v9  ;;  %v929_v29 = vld [vmem:[%s1026_s8 + $0x74] ss:$8 sps:$4 sm:$0x1f]   ;;  %v932_v31 = vld [vmem:[%s1026_s8 + $0x70] ss:$8 sps:$4 sm:$0x1f]  }
  0x18   : > { %783 = vmatprep.subr.bf16.mxu0 %v903_v10  ;;  %811 = vmatprep.subr.bf16.mxu1 %v903_v10 }
  0x1b   : > { %784 = vmatpush3.bf16.msra.mxu0 %v904_v13  ;;  %812 = vmatpush3.bf16.msra.mxu1 %v904_v13 }
  0x1c   : > { %785 = vmatprep.subr.bf16.mxu0 %v905_v14  ;;  %813 = vmatprep.subr.bf16.mxu1 %v905_v14 }
  0x1f   : > { %786 = vmatpush3.bf16.msra.mxu0 %v906_v15  ;;  %814 = vmatpush3.bf16.msra.mxu1 %v906_v15 }
  0x20   : > { %787 = vmatprep.subr.bf16.mxu0 %v907_v16  ;;  %815 = vmatprep.subr.bf16.mxu1 %v907_v16 }
  0x23   : > { %788 = vmatpush3.bf16.msra.mxu0 %v908_v17  ;;  %816 = vmatpush3.bf16.msra.mxu1 %v908_v17 }
  0x24   : > { %829 = vmatprep.subr.bf16.mxu0 %v893_v0  ;;  %857 = vmatprep.subr.bf16.mxu1 %v893_v0 }
  0x26   : > { %357 = vmatmul.mubr.bf16.vlgmr.msra.gmra.mrb[0].mxu0 %v909_v18  ;;  %431 = vmatmul.mubr.bf16.vlgmr.msra.gmra.mrb[0].mxu1 %v912_v19 }
  0x27   : > { %830 = vmatpush3.bf16.msra.mxu0 %v975_v1  ;;  %858 = vmatpush3.bf16.msra.mxu1 %v975_v1 }
  0x28   : > { %831 = vmatprep.subr.bf16.mxu0 %v895_v2  ;;  %859 = vmatprep.subr.bf16.mxu1 %v895_v2 }
  0x29   : > { %364 = vmatprep.mubr.bf16.mxu0 %v915_v20  ;;  %438 = vmatprep.mubr.bf16.mxu1 %v917_v21 }
  0x2b   : > { %832 = vmatpush3.bf16.msra.mxu0 %v985_v3  ;;  %860 = vmatpush3.bf16.msra.mxu1 %v985_v3 }
  0x2c   : > { %833 = vmatprep.subr.bf16.mxu0 %v990_v4  ;;  %861 = vmatprep.subr.bf16.mxu1 %v990_v4 }
  0x2e   : > { %365 = vmatmul.mubr.bf16.gmra.mrb[4].mxu0 %v919_v22  ;;  %439 = vmatmul.mubr.bf16.gmra.mrb[4].mxu1 %v920_v23 }
  0x2f   : > { %834 = vmatpush3.bf16.msra.mxu0 %v997_v5  ;;  %862 = vmatpush3.bf16.msra.mxu1 %v997_v5 }
  0x30   : > { %835 = vmatprep.subr.bf16.mxu0 %v1006_v6  ;;  %863 = vmatprep.subr.bf16.mxu1 %v1006_v6 }
  0x31   : > { %508 = vmatprep.mubr.bf16.mxu0 %v923_v24  ;;  %586 = vmatprep.mubr.bf16.mxu1 %v926_v25 }
  0x33   : > { %836 = vmatpush3.bf16.msra.mxu0 %v1013_v7  ;;  %864 = vmatpush3.bf16.msra.mxu1 %v1013_v7 }
  0x34   : > { %837 = vmatprep.subr.bf16.mxu0 %v1021_v8  ;;  %865 = vmatprep.subr.bf16.mxu1 %v1021_v8 }
  0x37   : > { %838 = vmatpush3.bf16.msra.mxu0 %v902_v9  ;;  %866 = vmatpush3.bf16.msra.mxu1 %v902_v9  ;;  %v755_v9 = vld [vmem:[%s1095_s2] ss:$0 sm:$0xff] }
  0x38   : > { %839 = vmatprep.subr.bf16.mxu0 %v903_v10  ;;  %867 = vmatprep.subr.bf16.mxu1 %v903_v10 }
  0x3b   : > { %840 = vmatpush3.bf16.msra.mxu0 %v904_v13  ;;  %868 = vmatpush3.bf16.msra.mxu1 %v904_v13 }
  0x3c   : > { %841 = vmatprep.subr.bf16.mxu0 %v905_v14  ;;  %869 = vmatprep.subr.bf16.mxu1 %v905_v14 }
  0x3f   : > { %842 = vmatpush3.bf16.msra.mxu0 %v906_v15  ;;  %870 = vmatpush3.bf16.msra.mxu1 %v906_v15 }
  0x40   : > { %843 = vmatprep.subr.bf16.mxu0 %v907_v16  ;;  %871 = vmatprep.subr.bf16.mxu1 %v907_v16 }
  0x43   : > { %844 = vmatpush3.bf16.msra.mxu0 %v908_v17  ;;  %872 = vmatpush3.bf16.msra.mxu1 %v908_v17 }
  0x46   : > { %509 = vmatmul.mubr.bf16.vlgmr.msra.gmra.mrb[8].mxu0 %v921_v26  ;;  %587 = vmatmul.mubr.bf16.vlgmr.msra.gmra.mrb[8].mxu1 %v924_v27 }
  0x47   : > { %516 = vmatprep.mubr.bf16.mxu0 %v927_v28  ;;  %594 = vmatprep.mubr.bf16.mxu1 %v929_v29 }
  0x4e   : > { %517 = vmatmul.mubr.bf16.gmra.mrb[12].mxu0 %v931_v30  ;;  %595 = vmatmul.mubr.bf16.gmra.mrb[12].mxu1 %v932_v31 }
  0xf9   : > { %v789_v32 = vpop.f32.mrb[0].mxu0  ;;  %v817_v33 = vpop.f32.mrb[0].mxu1 }
  0xfa   : > { %v790_v34 = vpop.f32.mrb[1].mxu0  ;;  %v818_v35 = vpop.f32.mrb[1].mxu1 }
  0xfb   : > { %v791_v36 = vadd.f32 %v790_v34, %v789_v32  ;;  %v819_v37 = vadd.f32 %v818_v35, %v817_v33  ;;  %v792_v38 = vpop.f32.mrb[2].mxu0  ;;  %v820_v39 = vpop.f32.mrb[2].mxu1 }
  0xfc   : > { %v793_v40 = vpop.f32.mrb[3].mxu0  ;;  %v821_v41 = vpop.f32.mrb[3].mxu1 }
  0xfd   : > { %v447_v42 = vmax.f32 %v791_v36, %v819_v37  ;;  %v794_v43 = vadd.f32 %v793_v40, %v792_v38  ;;  %v822_v44 = vadd.f32 %v821_v41, %v820_v39  ;;  %v644_v39 = vld [vmem:[%s170_s30 + $0xc] sm:$0x1] }
  0xff   : > { %v448_v45 = vmax.f32 %v794_v43, %v822_v44 }
 0x101   : > { %v795_v46 = vpop.f32.mrb[4].mxu0  ;;  %v823_v47 = vpop.f32.mrb[4].mxu1 }
 0x102   : > { %v796_v48 = vpop.f32.mrb[5].mxu0  ;;  %v824_v49 = vpop.f32.mrb[5].mxu1 }
 0x103   : > { %v797_v50 = vadd.f32 %v796_v48, %v795_v46  ;;  %v825_v51 = vadd.f32 %v824_v49, %v823_v47  ;;  %v798_v52 = vpop.f32.mrb[6].mxu0  ;;  %v826_v53 = vpop.f32.mrb[6].mxu1 }
 0x104   : > { %v799_v54 = vpop.f32.mrb[7].mxu0  ;;  %v827_v55 = vpop.f32.mrb[7].mxu1 }
 0x105   : > { %v449_v56 = vmax.f32 %v797_v50, %v825_v51  ;;  %v800_v57 = vadd.f32 %v799_v54, %v798_v52  ;;  %v828_v58 = vadd.f32 %v827_v55, %v826_v53 }
 0x107   : > { %v450_v59 = vmax.f32 %v800_v57, %v828_v58 }
 0x119   : > { %v845_v60 = vpop.f32.mrb[8].mxu0  ;;  %v873_v61 = vpop.f32.mrb[8].mxu1 }
 0x11a   : > { %v846_v62 = vpop.f32.mrb[9].mxu0  ;;  %v874_v63 = vpop.f32.mrb[9].mxu1 }
 0x11b   : > { %v847_v0 = vadd.f32 %v846_v62, %v845_v60  ;;  %v875_v1 = vadd.f32 %v874_v63, %v873_v61  ;;  %v848_v2 = vpop.f32.mrb[10].mxu0  ;;  %v876_v3 = vpop.f32.mrb[10].mxu1 }
 0x11c   : > { %v849_v4 = vpop.f32.mrb[11].mxu0  ;;  %v877_v5 = vpop.f32.mrb[11].mxu1 }
 0x11d   : > { %v525_v6 = vmax.f32 %v447_v42, %v847_v0  ;;  %v850_v7 = vadd.f32 %v849_v4, %v848_v2  ;;  %v878_v8 = vadd.f32 %v877_v5, %v876_v3 }
 0x11f   : > { %v603_v10 = vmax.f32 %v525_v6, %v875_v1  ;;  %v526_v11 = vmax.f32 %v448_v45, %v850_v7 }
 0x121   : > { %v614_v12 = vadd.f32 %v755_v9, %v603_v10  ;;  %v604_v13 = vmax.f32 %v526_v11, %v878_v8  ;;  %v851_v14 = vpop.f32.mrb[12].mxu0  ;;  %v879_v15 = vpop.f32.mrb[12].mxu1 }
 0x122   : > { %v852_v16 = vpop.f32.mrb[13].mxu0  ;;  %v880_v17 = vpop.f32.mrb[13].mxu1 }
 0x123   : > { %v615_v18 = vadd.f32 %v755_v9, %v604_v13  ;;  %v853_v19 = vadd.f32 %v852_v16, %v851_v14  ;;  %v881_v20 = vadd.f32 %v880_v17, %v879_v15  ;;  %v854_v21 = vpop.f32.mrb[14].mxu0  ;;  %v882_v22 = vpop.f32.mrb[14].mxu1  ;;  %v618_v23 = vmax.f32 %v614_v12, 0.0 }
 0x124   : > { %v855_v24 = vpop.f32.mrb[15].mxu0  ;;  %v883_v25 = vpop.f32.mrb[15].mxu1 }
 0x125   : > { %v619_v26 = vmax.f32 %v615_v18, 0.0  ;;  %v527_v27 = vmax.f32 %v449_v56, %v853_v19  ;;  %v856_v28 = vadd.f32 %v855_v24, %v854_v21  ;;  %v884_v29 = vadd.f32 %v883_v25, %v882_v22 }
 0x127   : > { %v771_v30 = vpack.c.bf16 %v619_v26, %v618_v23  ;;  %v605_v31 = vmax.f32 %v527_v27, %v881_v20  ;;  %v528_v32 = vmax.f32 %v450_v59, %v856_v28 }
 0x129   : > { %772 = vst [vmem:[%s170_s30] sm:$0xff] %v771_v30   ;;  %v616_v33 = vadd.f32 %v755_v9, %v605_v31  ;;  %v606_v34 = vmax.f32 %v528_v32, %v884_v29 }
 0x12b   : > { %v620_v35 = vmax.f32 %v616_v33, 0.0  ;;  %v617_v36 = vadd.f32 %v755_v9, %v606_v34 }
 0x12d   : > { %v766_v37 = vpack.c.bf16 %v620_v35, %v620_v35  ;;  %v621_v38 = vmax.f32 %v617_v36, 0.0 }
 0x12f   : > { %640 = vst [vmem:[%s170_s30 + $0x8] sm:$0xf] %v766_v37  ;;  %v767_v40 = vpack.c.bf16 %v621_v38, %v621_v38 }
 0x131   : > { %v645_v41 = vsel %vm643_vm2, %v767_v40, %v644_v39 }
 0x132   : > { %646 = vst [vmem:[%s170_s30 + $0xc] sm:$0x1] %v645_v41 }
 0x133 PF: > { %s13_s12 = sadd.s32 1, %s939_s12  }
 0x134   : > { %p10_p4 = scmp.ge.s32.totalorder %s13_s12, 4  }
 0x136   :  { %12 = sbr.rel (!%p10_p4) target bundleno = 1 (0x1), region = 65 }

// kernel: lenet_forward.5
= control target key start
LH: loop header
LB: loop body
LE: loop exit
PB: predicated region body
PF: predicated region fallthrough
CT: control target
= control target key end

     0   :  { %v828_v39 = vmov 0.0   ;;  %vm829_vm0 = vmmov 0   ;;  %s1050_s1 = inlined_call_operand.vmem [shape: bf16[512,128], index: 1, kind: input, shape index: {}]   ;;  %s1051_s0 = inlined_call_operand.vmem [shape: bf16[8,512], index: 0, kind: input, shape index: {}]   ;;  %s1052_s3 = inlined_call_operand.vmem [shape: bf16[128,128], index: 3, kind: input, shape index: {}]   ;;  %s1053_s5 = inlined_call_operand.vmem [shape: bf16[128,128], index: 5, kind: input, shape index: {}]   ;;  %s1054_s2 = inlined_call_operand.vmem [shape: f32[1,128], index: 2, kind: input, shape index: {}]   ;;  %s1055_s4 = inlined_call_operand.vmem [shape: f32[1,128], index: 4, kind: input, shape index: {}]   ;;  %s1056_s6 = inlined_call_operand.vmem [shape: f32[1,128], index: 6, kind: input, shape index: {}]   ;;  %s1057_s7 = inlined_call_operand.vmem [shape: f32[8,128], index: 7, kind: output, shape index: {}]  }
   0x1   :  { %v776_v0 = vld [vmem:[%s1050_s1 + $0x40] sm:$0xff]   ;;  %v780_v4 = vld [vmem:[%s1050_s1 + $0x48] sm:$0xff]   ;;  %v784_v8 = vld [vmem:[%s1050_s1 + $0x50] sm:$0xff]  }
   0x2   :  { %v777_v1 = vld [vmem:[%s1050_s1 + $0xc0] sm:$0xff]   ;;  %672 = vmatprep.subr.bf16.mxu0 %v776_v0  ;;  %v781_v5 = vld [vmem:[%s1050_s1 + $0xc8] sm:$0xff]   ;;  %v785_v9 = vld [vmem:[%s1050_s1 + $0xd0] sm:$0xff]  }
   0x3   :  { %v778_v2 = vld [vmem:[%s1050_s1] sm:$0xff]   ;;  %694 = vmatprep.subr.bf16.mxu1 %v777_v1  ;;  %v782_v6 = vld [vmem:[%s1050_s1 + $0x8] sm:$0xff]   ;;  %v786_v10 = vld [vmem:[%s1050_s1 + $0x10] sm:$0xff]  }
   0x4   :  { %v779_v3 = vld [vmem:[%s1050_s1 + $0x80] sm:$0xff]   ;;  %673 = vmatpush3.bf16.msra.mxu0 %v778_v2  ;;  %v783_v7 = vld [vmem:[%s1050_s1 + $0x88] sm:$0xff]   ;;  %v787_v11 = vld [vmem:[%s1050_s1 + $0x90] sm:$0xff]  }
   0x5   :  { %695 = vmatpush3.bf16.msra.mxu1 %v779_v3  ;;  %674 = vmatprep.subr.bf16.mxu0 %v780_v4  ;;  %v788_v12 = vld [vmem:[%s1050_s1 + $0x58] sm:$0xff]   ;;  %v792_v16 = vld [vmem:[%s1050_s1 + $0x60] sm:$0xff]   ;;  %v796_v20 = vld [vmem:[%s1050_s1 + $0x68] sm:$0xff]  }
   0x6   :  { %696 = vmatprep.subr.bf16.mxu1 %v781_v5  ;;  %v789_v13 = vld [vmem:[%s1050_s1 + $0xd8] sm:$0xff]   ;;  %v793_v17 = vld [vmem:[%s1050_s1 + $0xe0] sm:$0xff]   ;;  %v797_v21 = vld [vmem:[%s1050_s1 + $0xe8] sm:$0xff]  }
   0x7   :  { %v790_v14 = vld [vmem:[%s1050_s1 + $0x18] sm:$0xff]   ;;  %v794_v18 = vld [vmem:[%s1050_s1 + $0x20] sm:$0xff]   ;;  %v798_v22 = vld [vmem:[%s1050_s1 + $0x28] sm:$0xff]  }
   0x8   :  { %675 = vmatpush3.bf16.msra.mxu0 %v782_v6  ;;  %v791_v15 = vld [vmem:[%s1050_s1 + $0x98] sm:$0xff]   ;;  %v795_v19 = vld [vmem:[%s1050_s1 + $0xa0] sm:$0xff]   ;;  %v799_v23 = vld [vmem:[%s1050_s1 + $0xa8] sm:$0xff]  }
   0x9   :  { %697 = vmatpush3.bf16.msra.mxu1 %v783_v7  ;;  %676 = vmatprep.subr.bf16.mxu0 %v784_v8  ;;  %v800_v24 = vld [vmem:[%s1050_s1 + $0x70] sm:$0xff]   ;;  %v804_v28 = vld [vmem:[%s1050_s1 + $0x78] sm:$0xff]   ;;  %v27_v32 = vld [vmem:[%s1051_s0] sm:$0xff] }
   0xa   :  { %698 = vmatprep.subr.bf16.mxu1 %v785_v9  ;;  %v801_v25 = vld [vmem:[%s1050_s1 + $0xf0] sm:$0xff]   ;;  %v805_v29 = vld [vmem:[%s1050_s1 + $0xf8] sm:$0xff]   ;;  %v28_v33 = vld [vmem:[%s1051_s0 + $0x8] sm:$0xff]  ;;  %v618_v34 = vcombine.low %v27_v32, %v27_v32  ;;  %v619_v35 = vcombine.high %v27_v32, %v27_v32 }
   0xb   :  { %v802_v26 = vld [vmem:[%s1050_s1 + $0x30] sm:$0xff]   ;;  %v806_v30 = vld [vmem:[%s1050_s1 + $0x38] sm:$0xff]   ;;  %v620_v36 = vcombine.low %v28_v33, %v28_v33  ;;  %v621_v37 = vcombine.high %v28_v33, %v28_v33  ;;  %v812_v38 = vld [vmem:[%s1052_s3] sm:$0xff]  }
   0xc   :  { %677 = vmatpush3.bf16.msra.mxu0 %v786_v10  ;;  %v803_v27 = vld [vmem:[%s1050_s1 + $0xb0] sm:$0xff]   ;;  %v807_v31 = vld [vmem:[%s1050_s1 + $0xb8] sm:$0xff]   ;;  %338 = vmatprep.mubr.bf16.mxu0 %v619_v35  ;;  %v813_v40 = vld [vmem:[%s1052_s3 + $0x8] sm:$0xff]  }
   0xd   :  { %699 = vmatpush3.bf16.msra.mxu1 %v787_v11  ;;  %678 = vmatprep.subr.bf16.mxu0 %v788_v12  ;;  %v814_v41 = vld [vmem:[%s1052_s3 + $0x10] sm:$0xff]   ;;  %v815_v42 = vld [vmem:[%s1052_s3 + $0x18] sm:$0xff]   ;;  %v816_v43 = vld [vmem:[%s1052_s3 + $0x20] sm:$0xff]  }
   0xe   :  { %700 = vmatprep.subr.bf16.mxu1 %v789_v13  ;;  %378 = vmatprep.mubr.bf16.mxu1 %v621_v37  ;;  %v817_v44 = vld [vmem:[%s1052_s3 + $0x28] sm:$0xff]   ;;  %v818_v45 = vld [vmem:[%s1052_s3 + $0x30] sm:$0xff]   ;;  %v819_v46 = vld [vmem:[%s1052_s3 + $0x38] sm:$0xff]  }
   0xf   :  { %v820_v47 = vld [vmem:[%s1053_s5] sm:$0xff]   ;;  %v821_v48 = vld [vmem:[%s1053_s5 + $0x8] sm:$0xff]   ;;  %v822_v49 = vld [vmem:[%s1053_s5 + $0x10] sm:$0xff]  }
  0x10   :  { %679 = vmatpush3.bf16.msra.mxu0 %v790_v14  ;;  %v823_v50 = vld [vmem:[%s1053_s5 + $0x18] sm:$0xff]   ;;  %v824_v51 = vld [vmem:[%s1053_s5 + $0x20] sm:$0xff]   ;;  %v825_v52 = vld [vmem:[%s1053_s5 + $0x28] sm:$0xff]  }
  0x11   :  { %701 = vmatpush3.bf16.msra.mxu1 %v791_v15  ;;  %680 = vmatprep.subr.bf16.mxu0 %v792_v16  ;;  %v617_v55 = vld [vmem:[%s1054_s2] ss:$0 sm:$0xff]  ;;  %v826_v4 = vld [vmem:[%s1053_s5 + $0x30] sm:$0xff]   ;;  %v827_v5 = vld [vmem:[%s1053_s5 + $0x38] sm:$0xff]  }
  0x12   :  { %702 = vmatprep.subr.bf16.mxu1 %v793_v17  ;;  %v654_v6 = vld [vmem:[%s1055_s4] ss:$0 sm:$0xff] }
  0x13   :  { %v663_v14 = vld [vmem:[%s1056_s6] ss:$0 sm:$0xff] }
  0x14   :  { %681 = vmatpush3.bf16.msra.mxu0 %v794_v18 }
  0x15   :  { %703 = vmatpush3.bf16.msra.mxu1 %v795_v19  ;;  %682 = vmatprep.subr.bf16.mxu0 %v796_v20 }
  0x16   :  { %704 = vmatprep.subr.bf16.mxu1 %v797_v21 }
  0x18   :  { %683 = vmatpush3.bf16.msra.mxu0 %v798_v22 }
  0x19   :  { %705 = vmatpush3.bf16.msra.mxu1 %v799_v23  ;;  %684 = vmatprep.subr.bf16.mxu0 %v800_v24 }
  0x1a   :  { %706 = vmatprep.subr.bf16.mxu1 %v801_v25 }
  0x1c   :  { %685 = vmatpush3.bf16.msra.mxu0 %v802_v26 }
  0x1d   :  { %707 = vmatpush3.bf16.msra.mxu1 %v803_v27  ;;  %686 = vmatprep.subr.bf16.mxu0 %v804_v28 }
  0x1e   :  { %708 = vmatprep.subr.bf16.mxu1 %v805_v29 }
  0x20   :  { %687 = vmatpush3.bf16.msra.mxu0 %v806_v30 }
  0x21   :  { %709 = vmatpush3.bf16.msra.mxu1 %v807_v31  ;;  %734 = vmatprep.subr.bf16.mxu0 %v828_v39 }
  0x22   :  { %754 = vmatprep.subr.bf16.mxu1 %v828_v39 }
  0x23   :  { %339 = vmatmul.mubr.bf16.vlgmr.msra.gmra.mrb[0].mxu0 %v618_v34 }
  0x24   :  { %379 = vmatmul.mubr.bf16.vlgmr.msra.gmra.mrb[0].mxu1 %v620_v36  ;;  %735 = vmatpush3.bf16.msra.mxu0 %v812_v38 }
  0x25   :  { %736 = vmatprep.subr.bf16.mxu0 %v828_v39  ;;  %750 = vmatprep.mubr.msk.bf16.mxu0 %vm829_vm0, %v828_v39 }
  0x26   :  { %770 = vmatprep.mubr.msk.bf16.mxu1 %vm829_vm0, %v828_v39  ;;  %755 = vmatpush3.bf16.msra.mxu1 %v820_v47 }
  0x27   :  { %756 = vmatprep.subr.bf16.mxu1 %v828_v39 }
  0x28   :  { %737 = vmatpush3.bf16.msra.mxu0 %v813_v40 }
  0x29   :  { %738 = vmatprep.subr.bf16.mxu0 %v828_v39 }
  0x2a   :  { %757 = vmatpush3.bf16.msra.mxu1 %v821_v48 }
  0x2b   :  { %758 = vmatprep.subr.bf16.mxu1 %v828_v39 }
  0x2c   :  { %739 = vmatpush3.bf16.msra.mxu0 %v814_v41 }
  0x2d   :  { %740 = vmatprep.subr.bf16.mxu0 %v828_v39 }
  0x2e   :  { %759 = vmatpush3.bf16.msra.mxu1 %v822_v49 }
  0x2f   :  { %760 = vmatprep.subr.bf16.mxu1 %v828_v39 }
  0x30   :  { %741 = vmatpush3.bf16.msra.mxu0 %v815_v42 }
  0x31   :  { %742 = vmatprep.subr.bf16.mxu0 %v828_v39 }
  0x32   :  { %761 = vmatpush3.bf16.msra.mxu1 %v823_v50 }
  0x33   :  { %762 = vmatprep.subr.bf16.mxu1 %v828_v39 }
  0x34   :  { %743 = vmatpush3.bf16.msra.mxu0 %v816_v43 }
  0x35   :  { %744 = vmatprep.subr.bf16.mxu0 %v828_v39 }
  0x36   :  { %763 = vmatpush3.bf16.msra.mxu1 %v824_v51 }
  0x37   :  { %764 = vmatprep.subr.bf16.mxu1 %v828_v39 }
  0x38   :  { %745 = vmatpush3.bf16.msra.mxu0 %v817_v44 }
  0x39   :  { %746 = vmatprep.subr.bf16.mxu0 %v828_v39 }
  0x3a   :  { %765 = vmatpush3.bf16.msra.mxu1 %v825_v52 }
  0x3b   :  { %766 = vmatprep.subr.bf16.mxu1 %v828_v39 }
  0x3c   :  { %747 = vmatpush3.bf16.msra.mxu0 %v818_v45 }
  0x3d   :  { %748 = vmatprep.subr.bf16.mxu0 %v828_v39 }
  0x3e   :  { %767 = vmatpush3.bf16.msra.mxu1 %v826_v4 }
  0x3f   :  { %768 = vmatprep.subr.bf16.mxu1 %v828_v39 }
  0x40   :  { %749 = vmatpush3.bf16.msra.mxu0 %v819_v46 }
  0x42   :  { %769 = vmatpush3.bf16.msra.mxu1 %v827_v5 }
  0xf6   :  { %v688_v53 = vpop.f32.mrb[0].mxu0 }
  0xf7   :  { %v710_v54 = vpop.f32.mrb[0].mxu1  ;;  %v689_v56 = vpop.f32.mrb[1].mxu0 }
  0xf8   :  { %v711_v57 = vpop.f32.mrb[1].mxu1  ;;  %v690_v58 = vadd.f32 %v689_v56, %v688_v53  ;;  %v691_v60 = vpop.f32.mrb[2].mxu0 }
  0xf9   :  { %v712_v59 = vadd.f32 %v711_v57, %v710_v54  ;;  %v713_v61 = vpop.f32.mrb[2].mxu1  ;;  %v692_v62 = vpop.f32.mrb[3].mxu0 }
  0xfa   :  { %v714_v63 = vpop.f32.mrb[3].mxu1  ;;  %v341_v0 = vadd.f32 %v690_v58, %v617_v55 }
  0xfc   :  { %v381_v1 = vadd.f32 %v712_v59, %v341_v0 }
  0xfe   :  { %v386_v2 = vmax.f32 %v381_v1, 0.0 }
 0x100   :  { %v387_v3 = vpack.c.bf16 %v386_v2, %v386_v2 }
 0x102   :  { %751 = vmatmul.mubr.bf16.vlgmr.msra.gmra.mrb[4].mxu0 %v387_v3 }
 0x1d5   :  { %v493_v7 = vpop.f32.mrb[4].mxu0 }
 0x1d6   :  { %v494_v8 = vadd.f32 %v654_v6, %v493_v7  ;;  %v752_v9 = vpop.f32.mrb[5].mxu0 }
 0x1d7   :  { %v496_v10 = vpop.f32.mrb[6].mxu0 }
 0x1d8   :  { %v499_v11 = vmax.f32 %v494_v8, 0.0  ;;  %v753_v12 = vpop.f32.mrb[7].mxu0 }
 0x1da   :  { %v500_v13 = vpack.c.bf16 %v499_v11, %v499_v11 }
 0x1dc   :  { %771 = vmatmul.mubr.bf16.vlgmr.msra.gmra.mrb[4].mxu1 %v500_v13 }
 0x2af   :  { %v606_v15 = vpop.f32.mrb[4].mxu1 }
 0x2b0   :  { %v607_v16 = vadd.f32 %v663_v14, %v606_v15  ;;  %v772_v17 = vpop.f32.mrb[5].mxu1 }
 0x2b1   :  { %v609_v18 = vpop.f32.mrb[6].mxu1 }
 0x2b2   :  { %612 = vst [vmem:[%s1057_s7] sm:$0xff] %v607_v16  ;;  %v773_v19 = vpop.f32.mrb[7].mxu1 }

</bundles_post_ra>
